<compile_context>
chip_gen: v7x
topology: tpu7x:2x2x1
jax: 0.10.0
libtpu: 0.0.40
codegen_flags: <defaults>
</compile_context>

<pallas_src>
import functools
import math

import jax
import jax.numpy as jnp
from jax.experimental import pallas as pl
from jax.experimental.pallas import tpu as pltpu


def _mha_kernel(h, d_k, n_kv, tk,
                q_ref, k_ref, v_ref,
                wq_ref, bq_ref,
                wk_ref, bk_ref,
                wv_ref, bv_ref,
                wo_ref, bo_ref,
                out_ref,
                q3_ref, k3_ref, v3_ref, ctx_ref):
    """Fused MHA for one (batch, query-tile) grid point.

    Block shapes:
      q_ref / out_ref : (1, TQ, D)   bf16 in / out dtype out
      k_ref / v_ref   : (1, S, D)    bf16 (block index only changes with b)
      w*_ref          : (D, D)       bf16 (already transposed: x @ w)
      b*_ref          : (1, D)       f32
    Scratch (persists across grid iterations):
      q3_ref          : (h, TQ, d_k) bf16   head-major Q (per query tile)
      k3_ref, v3_ref  : (h, S,  d_k) bf16   head-major K / V (written at qi==0)
      ctx_ref         : (TQ, D)      bf16   concatenated head outputs
    """
    inv_sqrt_dk = 1.0 / math.sqrt(d_k)
    qi = pl.program_id(1)

    # ---- K/V projection + head repack: once per batch (qi == 0). ------------
    # The K/V input blocks have index_map (b, 0, 0), so Pallas only re-DMAs
    # them when b changes — i.e. exactly when this branch runs.
    @pl.when(qi == 0)
    def _():
        kp = jnp.dot(k_ref[0], wk_ref[...],
                     preferred_element_type=jnp.float32) + bk_ref[...]
        vp = jnp.dot(v_ref[0], wv_ref[...],
                     preferred_element_type=jnp.float32) + bv_ref[...]
        for head in range(h):
            lo = head * d_k
            k3_ref[head] = kp[:, lo:lo + d_k].astype(jnp.bfloat16)
            v3_ref[head] = vp[:, lo:lo + d_k].astype(jnp.bfloat16)

    # ---- Q projection per query tile; fold 1/sqrt(d_k) into Q. -------------
    qp = (jnp.dot(q_ref[0], wq_ref[...],
                  preferred_element_type=jnp.float32) + bq_ref[...]) * inv_sqrt_dk
    for head in range(h):
        lo = head * d_k
        q3_ref[head] = qp[:, lo:lo + d_k].astype(jnp.bfloat16)

    q3 = q3_ref[...]                                   # (h, TQ, d_k) bf16
    tq = q3.shape[1]

    # ---- Online-softmax (flash) over K/V tiles of size tk. ------------------
    # Bounds the score / prob intermediates to (h, TQ, tk) f32 regardless of S.
    m = None
    l = None
    acc = None
    for kv in range(n_kv):
        lo = kv * tk
        k_t = k3_ref[:, lo:lo + tk, :]                 # (h, tk, d_k) bf16
        v_t = v3_ref[:, lo:lo + tk, :]
        s = jnp.einsum("hqd,hkd->hqk", q3, k_t,
                       preferred_element_type=jnp.float32)      # (h, TQ, tk) f32
        m_cur = jnp.max(s, axis=-1, keepdims=True)
        if kv == 0:
            m = m_cur
            p = jnp.exp(s - m)
            l = jnp.sum(p, axis=-1, keepdims=True)
            acc = jnp.einsum("hqk,hkd->hqd", p.astype(jnp.bfloat16), v_t,
                             preferred_element_type=jnp.float32)
        else:
            m_new = jnp.maximum(m, m_cur)
            alpha = jnp.exp(m - m_new)
            p = jnp.exp(s - m_new)
            l = alpha * l + jnp.sum(p, axis=-1, keepdims=True)
            acc = alpha * acc + jnp.einsum(
                "hqk,hkd->hqd", p.astype(jnp.bfloat16), v_t,
                preferred_element_type=jnp.float32)
            m = m_new

    # Final normalisation (EUP reciprocal; exact divide if training parity needed).
    ctx3 = acc * pl.reciprocal(l, approx=True)         # (h, TQ, d_k) f32

    # Write each head's output at its column offset (== transpose(1,2).view).
    for head in range(h):
        lo = head * d_k
        ctx_ref[:, lo:lo + d_k] = ctx3[head].astype(jnp.bfloat16)

    # ---- Output projection. --------------------------------------------------
    out = jnp.dot(ctx_ref[...], wo_ref[...],
                  preferred_element_type=jnp.float32) + bo_ref[...]
    out_ref[0] = out.astype(out_ref.dtype)


# --------------------------------------------------------------------------- #
# VMEM-aware tile selection
# --------------------------------------------------------------------------- #

def _padded_bytes(shape, itemsize):
    """Bytes of a VMEM allocation with (sublane, lane) padding of the minor dims."""
    shape = tuple(int(d) for d in shape)
    if len(shape) == 1:
        shape = (1,) + shape
    lead = 1
    for d in shape[:-2]:
        lead *= d
    r, c = shape[-2], shape[-1]
    sub = {4: 8, 2: 16, 1: 32}[itemsize]
    pr = -(-r // sub) * sub
    pc = -(-c // 128) * 128
    return lead * pr * pc * itemsize


def _estimate_vmem(S, D, h, d_k, tq, tk, out_itemsize=4):
    """Conservative VMEM estimate (padding-aware) for the kernel at (tq, tk)."""
    wb = 2 * 4 * _padded_bytes((D, D), 2)              # bf16 weights, double-buffered
    bb = 2 * 4 * _padded_bytes((1, D), 4)               # f32 biases
    qb = 2 * _padded_bytes((tq, D), 2)                  # bf16 Q block
    kvb = 2 * 2 * _padded_bytes((S, D), 2)               # bf16 K/V blocks
    ob = 2 * _padded_bytes((tq, D), out_itemsize)        # out block
    scr = (h * _padded_bytes((tq, d_k), 2)                # q3
           + 2 * h * _padded_bytes((S, d_k), 2)           # k3, v3
           + _padded_bytes((tq, D), 2))                   # ctx
    inter = (3 * h * _padded_bytes((tq, tk), 4)           # s, p(f32), p(bf16)~f32-bound
             + 2 * h * _padded_bytes((tq, d_k), 4)        # acc, ctx3
             + 6 * h * _padded_bytes((tq, 1), 4)          # m / l / alpha / m_new ...
             + _padded_bytes((tq, D), 4)                  # qp
             + 2 * _padded_bytes((S, D), 4))              # kp, vp (live at qi==0)
    return wb + bb + qb + kvb + ob + scr + inter


# Work within a budget that leaves headroom under v7x's 64 MiB VMEM.
_VMEM_BUDGET = 48 * 1024 * 1024
_VMEM_LIMIT_CAP = 56 * 1024 * 1024


def _pick_tiles(S, D, h, d_k):
    """Choose (TQ, TK): the largest standard tiles whose estimate fits the budget."""
    cands = [c for c in (512, 256, 128) if S % c == 0]
    if not cands:
        # Short (or ragged) sequences: a single full-sequence tile is legal
        # (block == full dim) and trivially fits for small S.
        # TODO(synk): pad/mask ragged long S with a pl.cdiv grid instead.
        return S, S
    for tq in cands:
        for tk in cands:
            if _estimate_vmem(S, D, h, d_k, tq, tk) <= _VMEM_BUDGET:
                return tq, tk
    return cands[-1], cands[-1]


# --------------------------------------------------------------------------- #
# pallas_call builder + public wrapper
# --------------------------------------------------------------------------- #

def _build_mha_call(B, S, D, h, d_k, tq, tk, out_dtype):
    nq = S // tq
    n_kv = S // tk

    q_spec = pl.BlockSpec((1, tq, D), lambda b, qi: (b, qi, 0))
    kv_spec = pl.BlockSpec((1, S, D), lambda b, qi: (b, 0, 0))
    out_spec = pl.BlockSpec((1, tq, D), lambda b, qi: (b, qi, 0))
    w_spec = pl.BlockSpec((D, D), lambda b, qi: (0, 0))
    b_spec = pl.BlockSpec((1, D), lambda b, qi: (0, 0))

    # Advisory cost estimate so XLA schedules surrounding ops sensibly.
    cost = pl.CostEstimate(
        flops=int(8 * B * S * D * D + 4 * B * S * S * D),
        transcendentals=int(B * h * S * S),
        bytes_accessed=int(3 * B * S * D * 2 + B * S * D * 4
                           + 4 * D * D * 2 + 4 * D * 4),
    )

    est = _estimate_vmem(S, D, h, d_k, tq, tk,
                         out_itemsize=jnp.dtype(out_dtype).itemsize)
    vmem_limit = int(min(max(int(est * 1.25), 32 * 1024 * 1024), _VMEM_LIMIT_CAP))

    kernel = functools.partial(_mha_kernel, h, d_k, n_kv, tk)

    return pl.pallas_call(
        kernel,
        out_shape=jax.ShapeDtypeStruct((B, S, D), out_dtype),
        grid_spec=pltpu.PrefetchScalarGridSpec(
            num_scalar_prefetch=0,
            grid=(B, nq),
            in_specs=[
                q_spec, kv_spec, kv_spec,
                w_spec, b_spec,
                w_spec, b_spec,
                w_spec, b_spec,
                w_spec, b_spec,
            ],
            out_specs=out_spec,
            scratch_shapes=[
                pltpu.VMEM((h, tq, d_k), jnp.bfloat16),
                pltpu.VMEM((h, S, d_k), jnp.bfloat16),
                pltpu.VMEM((h, S, d_k), jnp.bfloat16),
                pltpu.VMEM((tq, D), jnp.bfloat16),
            ],
        ),
        compiler_params=pltpu.CompilerParams(
            # Batch is independent (megacore-parallel); the qi axis carries the
            # persistent K/V scratch written at qi == 0, so it is "arbitrary".
            dimension_semantics=("parallel", "arbitrary"),
            vmem_limit_bytes=vmem_limit,
        ),
        cost_estimate=cost,
    )


def multi_headed_attention(query, key, value, params, h):
    """Pallas-backed MultiHeadedAttention forward (dropout = identity / eval).

    query/key/value: (B, S, D) float32.
    params: dict with 'wq','bq','wk','bk','wv','bv','wo','bo'
            (weights PyTorch-style (D_out, D_in), biases (D,)).
    """
    B, S, D = query.shape
    assert D % h == 0
    d_k = D // h
    out_dtype = query.dtype

    tq, tk = _pick_tiles(S, D, h, d_k)

    # bf16 activations and pre-transposed bf16 weights: halves DMA bytes and
    # feeds the MXU its native operand dtype.  Biases stay f32.
    def prep_x(x):
        return x.astype(jnp.bfloat16)

    def prep_w(w):
        return w.T.astype(jnp.bfloat16)

    def prep_b(b):
        return b.reshape(1, D).astype(jnp.float32)

    call = _build_mha_call(B, S, D, h, d_k, tq, tk, out_dtype)
    return call(prep_x(query), prep_x(key), prep_x(value),
                prep_w(params["wq"]), prep_b(params["bq"]),
                prep_w(params["wk"]), prep_b(params["bk"]),
                prep_w(params["wv"]), prep_b(params["bv"]),
                prep_w(params["wo"]), prep_b(params["bo"]))


# --------------------------------------------------------------------------- #
# Pure-JAX reference + self-test
# --------------------------------------------------------------------------- #

def _reference_mha(query, key, value, params, h):
    """Pure-JAX reference mirroring the PyTorch forward (dropout = identity)."""
    B, S, D = query.shape
    d_k = D // h

    def lin(x, w, b):
        return x @ w.T + b

    q = lin(query, params["wq"], params["bq"]).reshape(B, S, h, d_k).transpose(0, 2, 1, 3)
    k = lin(key,   params["wk"], params["bk"]).reshape(B, S, h, d_k).transpose(0, 2, 1, 3)
    v = lin(value, params["wv"], params["bv"]).reshape(B, S, h, d_k).transpose(0, 2, 1, 3)

    scores = jnp.einsum("bhqd,bhkd->bhqk", q, k) / math.sqrt(d_k)
    p = jax.nn.softmax(scores, axis=-1)
    ctx = jnp.einsum("bhqk,bhkd->bhqd", p, v)
    ctx = ctx.transpose(0, 2, 1, 3).reshape(B, S, D)
    return lin(ctx, params["wo"], params["bo"])


def _init_params(key, d_model):
    """Deterministic nn.Linear-style init: U(-1/sqrt(fan_in), 1/sqrt(fan_in))."""
    bound = 1.0 / math.sqrt(d_model)
    keys = jax.random.split(key, 8)
    names = ["wq", "bq", "wk", "bk", "wv", "bv", "wo", "bo"]
    params = {}
    for i, name in enumerate(names):
        shape = (d_model, d_model) if name.startswith("w") else (d_model,)
        params[name] = jax.random.uniform(
            keys[i], shape, jnp.float32, minval=-bound, maxval=bound)
    return params


if __name__ == "__main__":
    B, S, D, H = 2, 8, 32, 4   # batch, seq, d_model, heads (d_k = 8)

    root = jax.random.PRNGKey(0)
    k_q, k_k, k_v, k_p = jax.random.split(root, 4)

    query = jax.random.normal(k_q, (B, S, D), jnp.float32)
    key_ = jax.random.normal(k_k, (B, S, D), jnp.float32)
    value = jax.random.normal(k_v, (B, S, D), jnp.float32)
    params = _init_params(k_p, D)

    out = multi_headed_attention(query, key_, value, params, H)
    out = jax.block_until_ready(out)

    ref = _reference_mha(query, key_, value, params, H)
    assert out.shape == (B, S, D)
    # bf16 activations/weights (f32 accumulation, f32 softmax) -> small deviation vs f32 ref.
    assert jnp.allclose(out, ref, atol=2e-2, rtol=2e-2), "mismatch vs JAX reference"

    print("KERNEL_OK")
</pallas_src>

<mosaic_0001>
module attributes {stable_mosaic.version = 11 : i64} {
  func.func @_mha_kernel(%arg0: i32, %arg1: i32, %arg2: memref<1x8x32xbf16, #tpu.memory_space<vmem>>, %arg3: memref<1x8x32xbf16, #tpu.memory_space<vmem>>, %arg4: memref<1x8x32xbf16, #tpu.memory_space<vmem>>, %arg5: memref<32x32xbf16, #tpu.memory_space<vmem>>, %arg6: memref<1x32xf32, #tpu.memory_space<vmem>>, %arg7: memref<32x32xbf16, #tpu.memory_space<vmem>>, %arg8: memref<1x32xf32, #tpu.memory_space<vmem>>, %arg9: memref<32x32xbf16, #tpu.memory_space<vmem>>, %arg10: memref<1x32xf32, #tpu.memory_space<vmem>>, %arg11: memref<32x32xbf16, #tpu.memory_space<vmem>>, %arg12: memref<1x32xf32, #tpu.memory_space<vmem>>, %arg13: memref<1x8x32xf32, #tpu.memory_space<vmem>>, %arg14: memref<4x8x8xbf16, #tpu.memory_space<vmem>>, %arg15: memref<4x8x8xbf16, #tpu.memory_space<vmem>>, %arg16: memref<4x8x8xbf16, #tpu.memory_space<vmem>>, %arg17: memref<8x32xbf16, #tpu.memory_space<vmem>>) attributes {dimension_semantics = [#tpu.dimension_semantics<parallel>, #tpu.dimension_semantics<arbitrary>], iteration_bounds = array<i64: 2, 1>, scalar_prefetch = 0 : i64, scratch_operands = 4 : i64, tpu.core_type = #tpu.core_type<tc>, window_params = [{transform_indices = @transform_0, window_bounds = array<i64: 1, 8, 32>}, {transform_indices = @transform_1, window_bounds = array<i64: 1, 8, 32>}, {transform_indices = @transform_2, window_bounds = array<i64: 1, 8, 32>}, {pipeline_mode = #tpu.pipeline_mode<synchronous>, transform_indices = @transform_3, window_bounds = array<i64: 32, 32>}, {pipeline_mode = #tpu.pipeline_mode<synchronous>, transform_indices = @transform_4, window_bounds = array<i64: 1, 32>}, {pipeline_mode = #tpu.pipeline_mode<synchronous>, transform_indices = @transform_5, window_bounds = array<i64: 32, 32>}, {pipeline_mode = #tpu.pipeline_mode<synchronous>, transform_indices = @transform_6, window_bounds = array<i64: 1, 32>}, {pipeline_mode = #tpu.pipeline_mode<synchronous>, transform_indices = @transform_7, window_bounds = array<i64: 32, 32>}, {pipeline_mode = #tpu.pipeline_mode<synchronous>, transform_indices = @transform_8, window_bounds = array<i64: 1, 32>}, {pipeline_mode = #tpu.pipeline_mode<synchronous>, transform_indices = @transform_9, window_bounds = array<i64: 32, 32>}, {pipeline_mode = #tpu.pipeline_mode<synchronous>, transform_indices = @transform_10, window_bounds = array<i64: 1, 32>}, {transform_indices = @transform_11, window_bounds = array<i64: 1, 8, 32>}]} {
    %c0_i32 = arith.constant 0 : i32
    %0 = arith.cmpi eq, %arg1, %c0_i32 : i32
    %1 = arith.extui %0 : i1 to i32
    %c0_i32_0 = arith.constant 0 : i32
    %2 = arith.cmpi ne, %1, %c0_i32_0 : i32
    scf.if %2 {
      %c0_45 = arith.constant 0 : index
      %c0_46 = arith.constant 0 : index
      %c0_47 = arith.constant 0 : index
      %73 = vector.load %arg3[%c0_45, %c0_46, %c0_47] : memref<1x8x32xbf16, #tpu.memory_space<vmem>>, vector<1x8x32xbf16>
      %74 = vector.shape_cast %73 : vector<1x8x32xbf16> to vector<8x32xbf16>
      %c0_48 = arith.constant 0 : index
      %c0_49 = arith.constant 0 : index
      %75 = vector.load %arg7[%c0_48, %c0_49] : memref<32x32xbf16, #tpu.memory_space<vmem>>, vector<32x32xbf16>
      %cst_50 = arith.constant dense<0.000000e+00> : vector<8x32xf32>
      %76 = tpu.matmul %74, %75, %cst_50 {dimension_numbers = #tpu.dot_dimension_numbers<[1], [0], [0], [1], [0, 0, 1, 1], [], []>} : vector<8x32xbf16>, vector<32x32xbf16>, vector<8x32xf32> -> vector<8x32xf32>
      %c0_51 = arith.constant 0 : index
      %c0_52 = arith.constant 0 : index
      %77 = vector.load %arg8[%c0_51, %c0_52] : memref<1x32xf32, #tpu.memory_space<vmem>>, vector<1x32xf32>
      %78 = vector.broadcast %77 : vector<1x32xf32> to vector<8x32xf32>
      %79 = arith.addf %76, %78 : vector<8x32xf32>
      %c0_53 = arith.constant 0 : index
      %c0_54 = arith.constant 0 : index
      %c0_55 = arith.constant 0 : index
      %80 = vector.load %arg4[%c0_53, %c0_54, %c0_55] : memref<1x8x32xbf16, #tpu.memory_space<vmem>>, vector<1x8x32xbf16>
      %81 = vector.shape_cast %80 : vector<1x8x32xbf16> to vector<8x32xbf16>
      %c0_56 = arith.constant 0 : index
      %c0_57 = arith.constant 0 : index
      %82 = vector.load %arg9[%c0_56, %c0_57] : memref<32x32xbf16, #tpu.memory_space<vmem>>, vector<32x32xbf16>
      %cst_58 = arith.constant dense<0.000000e+00> : vector<8x32xf32>
      %83 = tpu.matmul %81, %82, %cst_58 {dimension_numbers = #tpu.dot_dimension_numbers<[1], [0], [0], [1], [0, 0, 1, 1], [], []>} : vector<8x32xbf16>, vector<32x32xbf16>, vector<8x32xf32> -> vector<8x32xf32>
      %c0_59 = arith.constant 0 : index
      %c0_60 = arith.constant 0 : index
      %84 = vector.load %arg10[%c0_59, %c0_60] : memref<1x32xf32, #tpu.memory_space<vmem>>, vector<1x32xf32>
      %85 = vector.broadcast %84 : vector<1x32xf32> to vector<8x32xf32>
      %86 = arith.addf %83, %85 : vector<8x32xf32>
      %87 = vector.extract_strided_slice %79 {offsets = [0, 0], sizes = [8, 8], strides = [1, 1]} : vector<8x32xf32> to vector<8x8xf32>
      %88 = arith.truncf %87 : vector<8x8xf32> to vector<8x8xbf16>
      %c0_61 = arith.constant 0 : index
      %c0_62 = arith.constant 0 : index
      %c0_63 = arith.constant 0 : index
      %89 = vector.load %arg15[%c0_61, %c0_62, %c0_63] : memref<4x8x8xbf16, #tpu.memory_space<vmem>>, vector<1x8x8xbf16>
      %90 = vector.shape_cast %89 : vector<1x8x8xbf16> to vector<8x8xbf16>
      %91 = vector.shape_cast %88 : vector<8x8xbf16> to vector<1x8x8xbf16>
      tpu.vector_store %arg15[%c0_61, %c0_62, %c0_63], %91 {strides = array<i32>} : memref<4x8x8xbf16, #tpu.memory_space<vmem>>, vector<1x8x8xbf16>,
      %92 = vector.extract_strided_slice %86 {offsets = [0, 0], sizes = [8, 8], strides = [1, 1]} : vector<8x32xf32> to vector<8x8xf32>
      %93 = arith.truncf %92 : vector<8x8xf32> to vector<8x8xbf16>
      %c0_64 = arith.constant 0 : index
      %c0_65 = arith.constant 0 : index
      %c0_66 = arith.constant 0 : index
      %94 = vector.load %arg16[%c0_64, %c0_65, %c0_66] : memref<4x8x8xbf16, #tpu.memory_space<vmem>>, vector<1x8x8xbf16>
      %95 = vector.shape_cast %94 : vector<1x8x8xbf16> to vector<8x8xbf16>
      %96 = vector.shape_cast %93 : vector<8x8xbf16> to vector<1x8x8xbf16>
      tpu.vector_store %arg16[%c0_64, %c0_65, %c0_66], %96 {strides = array<i32>} : memref<4x8x8xbf16, #tpu.memory_space<vmem>>, vector<1x8x8xbf16>,
      %97 = vector.extract_strided_slice %79 {offsets = [0, 8], sizes = [8, 8], strides = [1, 1]} : vector<8x32xf32> to vector<8x8xf32>
      %98 = arith.truncf %97 : vector<8x8xf32> to vector<8x8xbf16>
      %c1_67 = arith.constant 1 : index
      %c0_68 = arith.constant 0 : index
      %c0_69 = arith.constant 0 : index
      %99 = vector.load %arg15[%c1_67, %c0_68, %c0_69] : memref<4x8x8xbf16, #tpu.memory_space<vmem>>, vector<1x8x8xbf16>
      %100 = vector.shape_cast %99 : vector<1x8x8xbf16> to vector<8x8xbf16>
      %101 = vector.shape_cast %98 : vector<8x8xbf16> to vector<1x8x8xbf16>
      tpu.vector_store %arg15[%c1_67, %c0_68, %c0_69], %101 {strides = array<i32>} : memref<4x8x8xbf16, #tpu.memory_space<vmem>>, vector<1x8x8xbf16>,
      %102 = vector.extract_strided_slice %86 {offsets = [0, 8], sizes = [8, 8], strides = [1, 1]} : vector<8x32xf32> to vector<8x8xf32>
      %103 = arith.truncf %102 : vector<8x8xf32> to vector<8x8xbf16>
      %c1_70 = arith.constant 1 : index
      %c0_71 = arith.constant 0 : index
      %c0_72 = arith.constant 0 : index
      %104 = vector.load %arg16[%c1_70, %c0_71, %c0_72] : memref<4x8x8xbf16, #tpu.memory_space<vmem>>, vector<1x8x8xbf16>
      %105 = vector.shape_cast %104 : vector<1x8x8xbf16> to vector<8x8xbf16>
      %106 = vector.shape_cast %103 : vector<8x8xbf16> to vector<1x8x8xbf16>
      tpu.vector_store %arg16[%c1_70, %c0_71, %c0_72], %106 {strides = array<i32>} : memref<4x8x8xbf16, #tpu.memory_space<vmem>>, vector<1x8x8xbf16>,
      %107 = vector.extract_strided_slice %79 {offsets = [0, 16], sizes = [8, 8], strides = [1, 1]} : vector<8x32xf32> to vector<8x8xf32>
      %108 = arith.truncf %107 : vector<8x8xf32> to vector<8x8xbf16>
      %c2_73 = arith.constant 2 : index
      %c0_74 = arith.constant 0 : index
      %c0_75 = arith.constant 0 : index
      %109 = vector.load %arg15[%c2_73, %c0_74, %c0_75] : memref<4x8x8xbf16, #tpu.memory_space<vmem>>, vector<1x8x8xbf16>
      %110 = vector.shape_cast %109 : vector<1x8x8xbf16> to vector<8x8xbf16>
      %111 = vector.shape_cast %108 : vector<8x8xbf16> to vector<1x8x8xbf16>
      tpu.vector_store %arg15[%c2_73, %c0_74, %c0_75], %111 {strides = array<i32>} : memref<4x8x8xbf16, #tpu.memory_space<vmem>>, vector<1x8x8xbf16>,
      %112 = vector.extract_strided_slice %86 {offsets = [0, 16], sizes = [8, 8], strides = [1, 1]} : vector<8x32xf32> to vector<8x8xf32>
      %113 = arith.truncf %112 : vector<8x8xf32> to vector<8x8xbf16>
      %c2_76 = arith.constant 2 : index
      %c0_77 = arith.constant 0 : index
      %c0_78 = arith.constant 0 : index
      %114 = vector.load %arg16[%c2_76, %c0_77, %c0_78] : memref<4x8x8xbf16, #tpu.memory_space<vmem>>, vector<1x8x8xbf16>
      %115 = vector.shape_cast %114 : vector<1x8x8xbf16> to vector<8x8xbf16>
      %116 = vector.shape_cast %113 : vector<8x8xbf16> to vector<1x8x8xbf16>
      tpu.vector_store %arg16[%c2_76, %c0_77, %c0_78], %116 {strides = array<i32>} : memref<4x8x8xbf16, #tpu.memory_space<vmem>>, vector<1x8x8xbf16>,
      %117 = vector.extract_strided_slice %79 {offsets = [0, 24], sizes = [8, 8], strides = [1, 1]} : vector<8x32xf32> to vector<8x8xf32>
      %118 = arith.truncf %117 : vector<8x8xf32> to vector<8x8xbf16>
      %c3_79 = arith.constant 3 : index
      %c0_80 = arith.constant 0 : index
      %c0_81 = arith.constant 0 : index
      %119 = vector.load %arg15[%c3_79, %c0_80, %c0_81] : memref<4x8x8xbf16, #tpu.memory_space<vmem>>, vector<1x8x8xbf16>
      %120 = vector.shape_cast %119 : vector<1x8x8xbf16> to vector<8x8xbf16>
      %121 = vector.shape_cast %118 : vector<8x8xbf16> to vector<1x8x8xbf16>
      tpu.vector_store %arg15[%c3_79, %c0_80, %c0_81], %121 {strides = array<i32>} : memref<4x8x8xbf16, #tpu.memory_space<vmem>>, vector<1x8x8xbf16>,
      %122 = vector.extract_strided_slice %86 {offsets = [0, 24], sizes = [8, 8], strides = [1, 1]} : vector<8x32xf32> to vector<8x8xf32>
      %123 = arith.truncf %122 : vector<8x8xf32> to vector<8x8xbf16>
      %c3_82 = arith.constant 3 : index
      %c0_83 = arith.constant 0 : index
      %c0_84 = arith.constant 0 : index
      %124 = vector.load %arg16[%c3_82, %c0_83, %c0_84] : memref<4x8x8xbf16, #tpu.memory_space<vmem>>, vector<1x8x8xbf16>
      %125 = vector.shape_cast %124 : vector<1x8x8xbf16> to vector<8x8xbf16>
      %126 = vector.shape_cast %123 : vector<8x8xbf16> to vector<1x8x8xbf16>
      tpu.vector_store %arg16[%c3_82, %c0_83, %c0_84], %126 {strides = array<i32>} : memref<4x8x8xbf16, #tpu.memory_space<vmem>>, vector<1x8x8xbf16>,
    } else {
    }
    %c0 = arith.constant 0 : index
    %c0_1 = arith.constant 0 : index
    %c0_2 = arith.constant 0 : index
    %3 = vector.load %arg2[%c0, %c0_1, %c0_2] : memref<1x8x32xbf16, #tpu.memory_space<vmem>>, vector<1x8x32xbf16>
    %4 = vector.shape_cast %3 : vector<1x8x32xbf16> to vector<8x32xbf16>
    %c0_3 = arith.constant 0 : index
    %c0_4 = arith.constant 0 : index
    %5 = vector.load %arg5[%c0_3, %c0_4] : memref<32x32xbf16, #tpu.memory_space<vmem>>, vector<32x32xbf16>
    %cst = arith.constant dense<0.000000e+00> : vector<8x32xf32>
    %6 = tpu.matmul %4, %5, %cst {dimension_numbers = #tpu.dot_dimension_numbers<[1], [0], [0], [1], [0, 0, 1, 1], [], []>} : vector<8x32xbf16>, vector<32x32xbf16>, vector<8x32xf32> -> vector<8x32xf32>
    %c0_5 = arith.constant 0 : index
    %c0_6 = arith.constant 0 : index
    %7 = vector.load %arg6[%c0_5, %c0_6] : memref<1x32xf32, #tpu.memory_space<vmem>>, vector<1x32xf32>
    %8 = vector.broadcast %7 : vector<1x32xf32> to vector<8x32xf32>
    %9 = arith.addf %6, %8 : vector<8x32xf32>
    %cst_7 = arith.constant 0.353553385 : f32
    %10 = vector.broadcast %cst_7 : f32 to vector<8x32xf32>
    %11 = arith.mulf %9, %10 : vector<8x32xf32>
    %12 = vector.extract_strided_slice %11 {offsets = [0, 0], sizes = [8, 8], strides = [1, 1]} : vector<8x32xf32> to vector<8x8xf32>
    %13 = arith.truncf %12 : vector<8x8xf32> to vector<8x8xbf16>
    %c0_8 = arith.constant 0 : index
    %c0_9 = arith.constant 0 : index
    %c0_10 = arith.constant 0 : index
    %14 = vector.load %arg14[%c0_8, %c0_9, %c0_10] : memref<4x8x8xbf16, #tpu.memory_space<vmem>>, vector<1x8x8xbf16>
    %15 = vector.shape_cast %14 : vector<1x8x8xbf16> to vector<8x8xbf16>
    %16 = vector.shape_cast %13 : vector<8x8xbf16> to vector<1x8x8xbf16>
    tpu.vector_store %arg14[%c0_8, %c0_9, %c0_10], %16 {strides = array<i32>} : memref<4x8x8xbf16, #tpu.memory_space<vmem>>, vector<1x8x8xbf16>,
    %17 = vector.extract_strided_slice %11 {offsets = [0, 8], sizes = [8, 8], strides = [1, 1]} : vector<8x32xf32> to vector<8x8xf32>
    %18 = arith.truncf %17 : vector<8x8xf32> to vector<8x8xbf16>
    %c1 = arith.constant 1 : index
    %c0_11 = arith.constant 0 : index
    %c0_12 = arith.constant 0 : index
    %19 = vector.load %arg14[%c1, %c0_11, %c0_12] : memref<4x8x8xbf16, #tpu.memory_space<vmem>>, vector<1x8x8xbf16>
    %20 = vector.shape_cast %19 : vector<1x8x8xbf16> to vector<8x8xbf16>
    %21 = vector.shape_cast %18 : vector<8x8xbf16> to vector<1x8x8xbf16>
    tpu.vector_store %arg14[%c1, %c0_11, %c0_12], %21 {strides = array<i32>} : memref<4x8x8xbf16, #tpu.memory_space<vmem>>, vector<1x8x8xbf16>,
    %22 = vector.extract_strided_slice %11 {offsets = [0, 16], sizes = [8, 8], strides = [1, 1]} : vector<8x32xf32> to vector<8x8xf32>
    %23 = arith.truncf %22 : vector<8x8xf32> to vector<8x8xbf16>
    %c2 = arith.constant 2 : index
    %c0_13 = arith.constant 0 : index
    %c0_14 = arith.constant 0 : index
    %24 = vector.load %arg14[%c2, %c0_13, %c0_14] : memref<4x8x8xbf16, #tpu.memory_space<vmem>>, vector<1x8x8xbf16>
    %25 = vector.shape_cast %24 : vector<1x8x8xbf16> to vector<8x8xbf16>
    %26 = vector.shape_cast %23 : vector<8x8xbf16> to vector<1x8x8xbf16>
    tpu.vector_store %arg14[%c2, %c0_13, %c0_14], %26 {strides = array<i32>} : memref<4x8x8xbf16, #tpu.memory_space<vmem>>, vector<1x8x8xbf16>,
    %27 = vector.extract_strided_slice %11 {offsets = [0, 24], sizes = [8, 8], strides = [1, 1]} : vector<8x32xf32> to vector<8x8xf32>
    %28 = arith.truncf %27 : vector<8x8xf32> to vector<8x8xbf16>
    %c3 = arith.constant 3 : index
    %c0_15 = arith.constant 0 : index
    %c0_16 = arith.constant 0 : index
    %29 = vector.load %arg14[%c3, %c0_15, %c0_16] : memref<4x8x8xbf16, #tpu.memory_space<vmem>>, vector<1x8x8xbf16>
    %30 = vector.shape_cast %29 : vector<1x8x8xbf16> to vector<8x8xbf16>
    %31 = vector.shape_cast %28 : vector<8x8xbf16> to vector<1x8x8xbf16>
    tpu.vector_store %arg14[%c3, %c0_15, %c0_16], %31 {strides = array<i32>} : memref<4x8x8xbf16, #tpu.memory_space<vmem>>, vector<1x8x8xbf16>,
    %c0_17 = arith.constant 0 : index
    %c0_18 = arith.constant 0 : index
    %c0_19 = arith.constant 0 : index
    %32 = vector.load %arg14[%c0_17, %c0_18, %c0_19] : memref<4x8x8xbf16, #tpu.memory_space<vmem>>, vector<4x8x8xbf16>
    %c0_20 = arith.constant 0 : index
    %c0_21 = arith.constant 0 : index
    %c0_22 = arith.constant 0 : index
    %33 = vector.load %arg15[%c0_20, %c0_21, %c0_22] : memref<4x8x8xbf16, #tpu.memory_space<vmem>>, vector<4x8x8xbf16>
    %c0_23 = arith.constant 0 : index
    %c0_24 = arith.constant 0 : index
    %c0_25 = arith.constant 0 : index
    %34 = vector.load %arg16[%c0_23, %c0_24, %c0_25] : memref<4x8x8xbf16, #tpu.memory_space<vmem>>, vector<4x8x8xbf16>
    "tpu.trace_start"() <{level = 10 : i32, message = "hqd,hkd->hqk"}> : () -> ()
    %cst_26 = arith.constant dense<0.000000e+00> : vector<4x8x8xf32>
    %35 = tpu.matmul %32, %33, %cst_26 {dimension_numbers = #tpu.dot_dimension_numbers<[2], [2], [1], [1], [0, 0, 0, 1, 1, 1], [0], [0]>} : vector<4x8x8xbf16>, vector<4x8x8xbf16>, vector<4x8x8xf32> -> vector<4x8x8xf32>
    "tpu.trace_stop"() : () -> ()
    %cst_27 = arith.constant dense<0xFF800000> : vector<4x8xf32>
    %36 = vector.multi_reduction <maximumf>, %35, %cst_27 [2] : vector<4x8x8xf32> to vector<4x8xf32>
    %37 = vector.shape_cast %36 : vector<4x8xf32> to vector<4x8x1xf32>
    %38 = vector.broadcast %37 : vector<4x8x1xf32> to vector<4x8x8xf32>
    %39 = arith.subf %35, %38 : vector<4x8x8xf32>
    %40 = math.exp %39 : vector<4x8x8xf32>
    %cst_28 = arith.constant dense<0.000000e+00> : vector<4x8xf32>
    %41 = vector.multi_reduction <add>, %40, %cst_28 [2] : vector<4x8x8xf32> to vector<4x8xf32>
    %42 = vector.shape_cast %41 : vector<4x8xf32> to vector<4x8x1xf32>
    %43 = arith.truncf %40 : vector<4x8x8xf32> to vector<4x8x8xbf16>
    "tpu.trace_start"() <{level = 10 : i32, message = "hqk,hkd->hqd"}> : () -> ()
    %cst_29 = arith.constant dense<0.000000e+00> : vector<4x8x8xf32>
    %44 = tpu.matmul %43, %34, %cst_29 {dimension_numbers = #tpu.dot_dimension_numbers<[2], [1], [1], [2], [0, 0, 0, 1, 1, 2], [0], [0]>} : vector<4x8x8xbf16>, vector<4x8x8xbf16>, vector<4x8x8xf32> -> vector<4x8x8xf32>
    "tpu.trace_stop"() : () -> ()
    %45 = tpu.reciprocal %42 {approx = true} : vector<4x8x1xf32> -> vector<4x8x1xf32>
    %46 = vector.broadcast %45 : vector<4x8x1xf32> to vector<4x8x8xf32>
    %47 = arith.mulf %44, %46 : vector<4x8x8xf32>
    %48 = vector.extract_strided_slice %47 {offsets = [0, 0, 0], sizes = [1, 8, 8], strides = [1, 1, 1]} : vector<4x8x8xf32> to vector<1x8x8xf32>
    %49 = vector.shape_cast %48 : vector<1x8x8xf32> to vector<8x8xf32>
    %50 = arith.truncf %49 : vector<8x8xf32> to vector<8x8xbf16>
    %c0_30 = arith.constant 0 : index
    %c0_31 = arith.constant 0 : index
    %51 = vector.load %arg17[%c0_30, %c0_31] : memref<8x32xbf16, #tpu.memory_space<vmem>>, vector<8x8xbf16>
    tpu.vector_store %arg17[%c0_30, %c0_31], %50 {strides = array<i32>} : memref<8x32xbf16, #tpu.memory_space<vmem>>, vector<8x8xbf16>,
    %52 = vector.extract_strided_slice %47 {offsets = [1, 0, 0], sizes = [1, 8, 8], strides = [1, 1, 1]} : vector<4x8x8xf32> to vector<1x8x8xf32>
    %53 = vector.shape_cast %52 : vector<1x8x8xf32> to vector<8x8xf32>
    %54 = arith.truncf %53 : vector<8x8xf32> to vector<8x8xbf16>
    %c0_32 = arith.constant 0 : index
    %c8 = arith.constant 8 : index
    %55 = vector.load %arg17[%c0_32, %c8] : memref<8x32xbf16, #tpu.memory_space<vmem>>, vector<8x8xbf16>
    tpu.vector_store %arg17[%c0_32, %c8], %54 {strides = array<i32>} : memref<8x32xbf16, #tpu.memory_space<vmem>>, vector<8x8xbf16>,
    %56 = vector.extract_strided_slice %47 {offsets = [2, 0, 0], sizes = [1, 8, 8], strides = [1, 1, 1]} : vector<4x8x8xf32> to vector<1x8x8xf32>
    %57 = vector.shape_cast %56 : vector<1x8x8xf32> to vector<8x8xf32>
    %58 = arith.truncf %57 : vector<8x8xf32> to vector<8x8xbf16>
    %c0_33 = arith.constant 0 : index
    %c16 = arith.constant 16 : index
    %59 = vector.load %arg17[%c0_33, %c16] : memref<8x32xbf16, #tpu.memory_space<vmem>>, vector<8x8xbf16>
    tpu.vector_store %arg17[%c0_33, %c16], %58 {strides = array<i32>} : memref<8x32xbf16, #tpu.memory_space<vmem>>, vector<8x8xbf16>,
    %60 = vector.extract_strided_slice %47 {offsets = [3, 0, 0], sizes = [1, 8, 8], strides = [1, 1, 1]} : vector<4x8x8xf32> to vector<1x8x8xf32>
    %61 = vector.shape_cast %60 : vector<1x8x8xf32> to vector<8x8xf32>
    %62 = arith.truncf %61 : vector<8x8xf32> to vector<8x8xbf16>
    %c0_34 = arith.constant 0 : index
    %c24 = arith.constant 24 : index
    %63 = vector.load %arg17[%c0_34, %c24] : memref<8x32xbf16, #tpu.memory_space<vmem>>, vector<8x8xbf16>
    tpu.vector_store %arg17[%c0_34, %c24], %62 {strides = array<i32>} : memref<8x32xbf16, #tpu.memory_space<vmem>>, vector<8x8xbf16>,
    %c0_35 = arith.constant 0 : index
    %c0_36 = arith.constant 0 : index
    %64 = vector.load %arg17[%c0_35, %c0_36] : memref<8x32xbf16, #tpu.memory_space<vmem>>, vector<8x32xbf16>
    %c0_37 = arith.constant 0 : index
    %c0_38 = arith.constant 0 : index
    %65 = vector.load %arg11[%c0_37, %c0_38] : memref<32x32xbf16, #tpu.memory_space<vmem>>, vector<32x32xbf16>
    %cst_39 = arith.constant dense<0.000000e+00> : vector<8x32xf32>
    %66 = tpu.matmul %64, %65, %cst_39 {dimension_numbers = #tpu.dot_dimension_numbers<[1], [0], [0], [1], [0, 0, 1, 1], [], []>} : vector<8x32xbf16>, vector<32x32xbf16>, vector<8x32xf32> -> vector<8x32xf32>
    %c0_40 = arith.constant 0 : index
    %c0_41 = arith.constant 0 : index
    %67 = vector.load %arg12[%c0_40, %c0_41] : memref<1x32xf32, #tpu.memory_space<vmem>>, vector<1x32xf32>
    %68 = vector.broadcast %67 : vector<1x32xf32> to vector<8x32xf32>
    %69 = arith.addf %66, %68 : vector<8x32xf32>
    %c0_42 = arith.constant 0 : index
    %c0_43 = arith.constant 0 : index
    %c0_44 = arith.constant 0 : index
    %70 = vector.load %arg13[%c0_42, %c0_43, %c0_44] : memref<1x8x32xf32, #tpu.memory_space<vmem>>, vector<1x8x32xf32>
    %71 = vector.shape_cast %70 : vector<1x8x32xf32> to vector<8x32xf32>
    %72 = vector.shape_cast %69 : vector<8x32xf32> to vector<1x8x32xf32>
    tpu.vector_store %arg13[%c0_42, %c0_43, %c0_44], %72 {strides = array<i32>} : memref<1x8x32xf32, #tpu.memory_space<vmem>>, vector<1x8x32xf32>,
    return
  }
  func.func @transform_0(%arg0: i32, %arg1: i32) -> (i32, i32, i32) {
    %c0_i32 = arith.constant 0 : i32
    %c0_i32_0 = arith.constant 0 : i32
    return %arg0, %arg1, %c0_i32 : i32, i32, i32
  }
  func.func @transform_1(%arg0: i32, %arg1: i32) -> (i32, i32, i32) {
    %c0_i32 = arith.constant 0 : i32
    %c0_i32_0 = arith.constant 0 : i32
    %c0_i32_1 = arith.constant 0 : i32
    return %arg0, %c0_i32, %c0_i32_0 : i32, i32, i32
  }
  func.func @transform_2(%arg0: i32, %arg1: i32) -> (i32, i32, i32) {
    %c0_i32 = arith.constant 0 : i32
    %c0_i32_0 = arith.constant 0 : i32
    %c0_i32_1 = arith.constant 0 : i32
    return %arg0, %c0_i32, %c0_i32_0 : i32, i32, i32
  }
  func.func @transform_3(%arg0: i32, %arg1: i32) -> (i32, i32) {
    %c0_i32 = arith.constant 0 : i32
    %c0_i32_0 = arith.constant 0 : i32
    %c0_i32_1 = arith.constant 0 : i32
    return %c0_i32, %c0_i32_0 : i32, i32
  }
  func.func @transform_4(%arg0: i32, %arg1: i32) -> (i32, i32) {
    %c0_i32 = arith.constant 0 : i32
    %c0_i32_0 = arith.constant 0 : i32
    %c0_i32_1 = arith.constant 0 : i32
    return %c0_i32, %c0_i32_0 : i32, i32
  }
  func.func @transform_5(%arg0: i32, %arg1: i32) -> (i32, i32) {
    %c0_i32 = arith.constant 0 : i32
    %c0_i32_0 = arith.constant 0 : i32
    %c0_i32_1 = arith.constant 0 : i32
    return %c0_i32, %c0_i32_0 : i32, i32
  }
  func.func @transform_6(%arg0: i32, %arg1: i32) -> (i32, i32) {
    %c0_i32 = arith.constant 0 : i32
    %c0_i32_0 = arith.constant 0 : i32
    %c0_i32_1 = arith.constant 0 : i32
    return %c0_i32, %c0_i32_0 : i32, i32
  }
  func.func @transform_7(%arg0: i32, %arg1: i32) -> (i32, i32) {
    %c0_i32 = arith.constant 0 : i32
    %c0_i32_0 = arith.constant 0 : i32
    %c0_i32_1 = arith.constant 0 : i32
    return %c0_i32, %c0_i32_0 : i32, i32
  }
  func.func @transform_8(%arg0: i32, %arg1: i32) -> (i32, i32) {
    %c0_i32 = arith.constant 0 : i32
    %c0_i32_0 = arith.constant 0 : i32
    %c0_i32_1 = arith.constant 0 : i32
    return %c0_i32, %c0_i32_0 : i32, i32
  }
  func.func @transform_9(%arg0: i32, %arg1: i32) -> (i32, i32) {
    %c0_i32 = arith.constant 0 : i32
    %c0_i32_0 = arith.constant 0 : i32
    %c0_i32_1 = arith.constant 0 : i32
    return %c0_i32, %c0_i32_0 : i32, i32
  }
  func.func @transform_10(%arg0: i32, %arg1: i32) -> (i32, i32) {
    %c0_i32 = arith.constant 0 : i32
    %c0_i32_0 = arith.constant 0 : i32
    %c0_i32_1 = arith.constant 0 : i32
    return %c0_i32, %c0_i32_0 : i32, i32
  }
  func.func @transform_11(%arg0: i32, %arg1: i32) -> (i32, i32, i32) {
    %c0_i32 = arith.constant 0 : i32
    %c0_i32_0 = arith.constant 0 : i32
    return %arg0, %arg1, %c0_i32 : i32, i32, i32
  }
}

</mosaic_0001>

<bundles_post_ra>
// kernel: tpu_custom_call.1
= control target key start
LH: loop header
LB: loop body
LE: loop exit
PB: predicated region body
PF: predicated region fallthrough
CT: control target
= control target key end

     0   :  { %s2609_s0 = inlined_call_operand.hbm [shape: bf16[2,8,32], index: 0, kind: input, shape index: {}]   ;;  %s2610_s1 = inlined_call_operand.hbm [shape: bf16[2,8,32], index: 1, kind: input, shape index: {}]   ;;  %s2611_s2 = inlined_call_operand.hbm [shape: bf16[2,8,32], index: 2, kind: input, shape index: {}]   ;;  %s2612_s3 = inlined_call_operand.hbm [shape: bf16[32,32], index: 3, kind: input, shape index: {}]   ;;  %s2613_s4 = inlined_call_operand.vmem [shape: f32[1,32], index: 4, kind: input, shape index: {}]   ;;  %s2614_s5 = inlined_call_operand.vmem [shape: bf16[32,32], index: 5, kind: input, shape index: {}]   ;;  %s2615_s6 = inlined_call_operand.vmem [shape: f32[1,32], index: 6, kind: input, shape index: {}]   ;;  %s2616_s7 = inlined_call_operand.hbm [shape: bf16[32,32], index: 7, kind: input, shape index: {}]   ;;  %s2617_s8 = inlined_call_operand.hbm [shape: f32[1,32], index: 8, kind: input, shape index: {}]   ;;  %s2618_s9 = inlined_call_operand.vmem [shape: bf16[32,32], index: 9, kind: input, shape index: {}]   ;;  %s2619_s10 = inlined_call_operand.vmem [shape: f32[1,32], index: 10, kind: input, shape index: {}]   ;;  %s2620_s11 = inlined_call_operand.hbm [shape: f32[2,8,32], index: 11, kind: output, shape index: {}]  }
   0x1   :  { %2646 = sst [smem:[#allocation31_spill]] %s2610_s1 }
   0x2   :  { %2647 = sst [smem:[#allocation32_spill]] %s2612_s3 }
   0x3   :  { %2648 = sst [smem:[#allocation33_spill]] %s2613_s4 }
   0x4   :  { %2649 = sst [smem:[#allocation34_spill]] %s2615_s6 }
   0x5   :  { %2650 = sst [smem:[#allocation35_spill]] %s2618_s9 }
   0x6   :  { %2651 = sst [smem:[#allocation36_spill]] %s2619_s10 }
   0x7   :  { %2652 = sst [smem:[#allocation37_spill]] %s2620_s11 }
   0x8   :  { %16 = vsyncpa [#allocation7], 0 }
   0x9   :  { %18 = vsyncpa [#allocation7 + $0x1], 0 }
   0xa   :  { %19 = vsyncpa [#allocation10], 0 }
   0xb   :  { %21 = vsyncpa [#allocation10 + $0x1], 0 }
   0xc   :  { %22 = vsyncpa [#allocation13], 0 }
   0xd   :  { %23 = vsyncpa [#allocation16], 0 }
   0xe   :  { %24 = vsyncpa [#allocation8], 0 }
   0xf   :  { %26 = vsyncpa [#allocation8 + $0x1], 0  ;;  %s2150_s17 = smov 0   ;;  %s2152_s18 = smov 0  }
  0x10   :  { %s2154_s19 = smov 0   ;;  %s2156_s20 = smov 0  }
  0x11   :  { %s2158_s21 = smov 0   ;;  %s2160_s22 = smov 0  }
  0x12 LB: > { %2653 = sst [smem:[#allocation23_spill]] %s2051_s17  ;;  %s2181_s23 = sadd.s32 4294967295, %s2071_s22   ;;  %s2071_s22 = sphi %s2160_s22, %s32_s22   ;;  %s2067_s21 = sphi %s2158_s21, %s2701_s21   ;;  %s2063_s20 = sphi %s2156_s20, %s2700_s20   ;;  %s2059_s19 = sphi %s2154_s19, %s2704_s19   ;;  %s2055_s18 = sphi %s2152_s18, %s2703_s18   ;;  %s2051_s17 = sphi %s2150_s17, %s2702_s17  }
  0x13   : > { %2654 = sst [smem:[#allocation24_spill]] %s2063_s20  ;;  %s1498_s24 = sadd.s32 4294967294, %s2071_s22  }
  0x14   : > { %2655 = sst [smem:[#allocation25_spill]] %s2067_s21  ;;  %p66_p0 = scmp.ne.s32.totalorder %s2055_s18, %s2051_s17 }
  0x15   : > { %2656 = sst [smem:[#allocation26_spill]] %s2071_s22  ;;  %p2623_p1 = scmp.eq.s32.totalorder %s2181_s23, 0 }
  0x16   : > { %p318_p3 = scmp.eq.s32.totalorder %s1498_s24, 1  ;;  %p1499_p5 = scmp.ge.s32.totalorder %s2071_s22, 1 }
  0x17   : > { %p2190_p4 = por %p2623_p1, %p66_p0  ;;  %p325_p7 = scmp.lt.s32.totalorder %s2071_s22, 3 }
  0x18   : > { %p2195_p6 = por %p318_p3, %p66_p0  ;;  %s2073_s28 = smov [#allocation12]  }
  0x19   : > { %s2657_s25 = scalar_select %p2190_p4, 1, 0 }
  0x1a   : > { %s2658_s26 = scalar_select %p2195_p6, 1, 0 }
  0x1b   : > { %p2200_p8 = pnand %p1499_p5, %p325_p7  ;;  %s337_s29 = sshll.u32 %s2073_s28, 4  ;;  %s338_s29 = int_to_ptr.vmem [resolvable:$true] %s337_s29 }
  0x1c   : > { %2659 = sst [smem:[#allocation27_spill]] %s2658_s26  ;;  %s44_s12 = sadd.s32 1, %s2067_s21 }
  0x1d   : > { %s2660_s27 = scalar_select %p2200_p8, 1, 0 }
  0x1e   : > { %p1686_p9 = pneg %p2200_p8  ;;  %s2662_s3 = sld [smem:[#allocation32_spill]] }
  0x20   : > { %p2209_p11 = pnand %p1686_p9, %p2623_p1 }
  0x22   : > { %s2661_s30 = scalar_select %p2209_p11, 1, 0 }
  0x23   : > { %p2222_p13 = pneg %p2209_p11 }
  0x24   : > { %s1803_s15 = scalar_lea.hbm %s2662_s3, 256 }
  0x25   : > { %p1804_p12 = scmp.ne.s32.totalorder %s2662_s3, %s1803_s15  ;;  %p1810_p5 = scmp.lt.u32.totalorder %s1803_s15, %s2662_s3 }
  0x26   : > { %s2663_s28 = scalar_select %p2222_p13, 1, 0 }
  0x27   : > { %p1806_p0 = pnand %p2222_p13, %p1804_p12 }
  0x29   : > { %p1807_p3 = pneg %p1806_p0 }
  0x2b   : > { %p1812_p7 = pnand %p1810_p5, %p1807_p3 }
  0x2d   : > { %1815 = shalt.err (!%p1812_p7)
}
  0x2e   : > { %s1816_s13 = scalar_lea.vmem %s338_s29, 256  ;;  %p1824_p2 = scmp.lt.s32.totalorder %s338_s29, %s338_s29 }
  0x2f   : > { %p1817_p9 = scmp.ne.s32.totalorder %s338_s29, %s1816_s13  ;;  %p1825_p6 = scmp.lt.s32.totalorder %s1816_s13, %s1816_s13 }
  0x31   : > { %p1819_p10 = pnand %p1817_p9, %p2222_p13  ;;  %p1826_p4 = por %p1825_p6, %p1824_p2 }
  0x33   : > { %p1820_p1 = pneg %p1819_p10 }
  0x35   : > { %p1827_p8 = pnand %p1826_p4, %p1820_p1 }
  0x37   : > { %1830 = shalt.err (!%p1827_p8)
}
  0x38   : > { %s2627_s14 = smov 64   ;;  %s2628_s17 = smov 4  }
  0x39   : > { %1689 = dma.hbm_to_vmem [thread:$0]  (!%p2209_p11), %s2662_s3, 256, %s338_s29, [#allocation13], %s2627_s14, %s2627_s14, %s2628_s17  }
  0x3a   : > { %p46_p1 = scmp.ge.s32.totalorder %s44_s12, 2  ;;  %s53_s16 = sadd.s32 1, %s2059_s19 }
  0x3b   : > { %p60_p2 = scmp.ne.s32.totalorder %s2059_s19, %s2055_s18  ;;  %p61_p4 = scmp.eq.s32.totalorder %s2071_s22, 0 }
  0x3c   : > { %s2706_s12 = smov (%p46_p1, %s44_s12), 0  ;;  %p2665_p8 = scmp.eq.s32.totalorder %s2181_s23, 1 }
  0x3d   : > { %2664 = sst [smem:[#allocation28_spill]] %s2706_s12  ;;  %p62_p6 = por %p61_p4, %p60_p2 }
  0x3e   : > { %p2249_p10 = por %p2665_p8, %p60_p2  ;;  %s48_s13 = ssub.s32 %s2067_s21, %s2706_s12 }
  0x3f   : > { %p1713_p12 = scmp.lt.s32.totalorder %s2071_s22, 2  ;;  %p51_p0 = scmp.eq.s32.totalorder %s48_s13, 0 }
  0x40   : > { %s2666_s24 = scalar_select %p2249_p10, 1, 0 }
  0x41   : > { %s2630_s11 = sand.u32 1, %s2059_s19   ;;  %s2262_s26 = sshll.u32 %s2067_s21, 6 }
  0x42   : > { %2667 = sst [smem:[#allocation29_spill]] %s2666_s24  ;;  %s2259_s29 = sshll.u32 %s2630_s11, 2 }
  0x43   : > { %s2265_s15 = scalar_select %p51_p0, %s2059_s19, %s53_s16  }
  0x44   : > { %p2267_p3 = pnand %p1713_p12, %p62_p6  ;;  %s409_s17 = sand.u32 1, %s2071_s22  }
  0x45   : > { %2668 = sst [smem:[#allocation30_spill]] %s2265_s15  ;;  %s2670_s1 = sld [smem:[#allocation31_spill]] }
  0x46   : > { %s2669_s14 = scalar_select %p2267_p3, 1, 0 }
  0x47   : > { %s413_s11 = scalar_lea.vmem [#allocation9], %s2259_s29  ;;  %s2076_s16 = smov [#allocation14]  }
  0x48   : > { %s420_s21 = sshll.u32 %s413_s11, 4  ;;  %s2281_s15 = sshll.u32 %s2076_s16, 4  ;;  %s2279_s21 = int_to_ptr.vmem [resolvable:$true] %s420_s21  ;;  %s360_s15 = int_to_ptr.vmem [resolvable:$true] %s2281_s15 }
  0x49   : > { %s2283_s24 = scalar_lea.sflag [#allocation10], %s409_s17  ;;  %p2289_p7 = pneg %p2267_p3 }
  0x4b   : > { %s2276_s13 = scalar_lea.hbm %s2670_s1, %s2262_s26  ;;  %s1836_s22 = scalar_lea.hbm %s2670_s1, 128 }
  0x4c   : > { %s1831_s10 = scalar_lea.hbm %s2276_s13, 64  ;;  %p1837_p2 = scmp.lt.u32.totalorder %s2276_s13, %s2670_s1 }
  0x4d   : > { %p1832_p5 = scmp.ne.s32.totalorder %s2276_s13, %s1831_s10  ;;  %p1838_p4 = scmp.lt.u32.totalorder %s1836_s22, %s1831_s10 }
  0x4e   : > { %s2671_s3 = scalar_select %p2289_p7, 1, 0 }
  0x4f   : > { %p1834_p9 = pnand %p2289_p7, %p1832_p5  ;;  %p1839_p6 = por %p1838_p4, %p1837_p2 }
  0x50   : > { %p1840_p8 = scmp.lt.u32.totalorder %s1831_s10, %s2276_s13 }
  0x51   : > { %p1835_p1 = pneg %p1834_p9 }
  0x52   : > { %p1841_p12 = por %p1840_p8, %p1839_p6 }
  0x54   : > { %p1842_p0 = pnand %p1841_p12, %p1835_p1 }
  0x56   : > { %1845 = shalt.err (!%p1842_p0)
}
  0x57   : > { %s1846_s17 = scalar_lea.vmem %s2279_s21, 64  ;;  %s2077_s12 = smov [#allocation9]  }
  0x58   : > { %p1847_p5 = scmp.ne.s32.totalorder %s2279_s21, %s1846_s17  ;;  %s1851_s11 = sshll.u32 %s2077_s12, 4  ;;  %s1852_s11 = int_to_ptr.vmem [resolvable:$false] %s1851_s11 }
  0x59   : > { %s1853_s20 = scalar_lea.vmem %s1852_s11, 128  ;;  %p1854_p11 = scmp.lt.s32.totalorder %s2279_s21, %s1852_s11 }
  0x5a   : > { %p1849_p9 = pnand %p1847_p5, %p2289_p7  ;;  %p1855_p13 = scmp.lt.s32.totalorder %s1853_s20, %s1846_s17 }
  0x5c   : > { %p1850_p10 = pneg %p1849_p9  ;;  %p1856_p2 = por %p1855_p13, %p1854_p11 }
  0x5e   : > { %p1857_p4 = pnand %p1856_p2, %p1850_p10 }
  0x60   : > { %1860 = shalt.err (!%p1857_p4)
}
  0x61   : > { %1702 = dma.hbm_to_vmem [thread:$0]  (!%p2267_p3), %s2276_s13, 64, %s2279_s21, %s2283_s24  }
  0x62   : > { %s1861_s16 = scalar_lea.hbm %s2616_s7, 256  ;;  %p2672_p11 = scmp.ne.s32.totalorder %s2663_s28, 0 }
  0x63   : > { %p1862_p1 = scmp.ne.s32.totalorder %s2616_s7, %s1861_s16  ;;  %p1868_p6 = scmp.lt.u32.totalorder %s1861_s16, %s2616_s7 }
  0x65   : > { %p1864_p13 = pnand %p1862_p1, %p2672_p11 }
  0x67   : > { %p1865_p10 = pneg %p1864_p13 }
  0x69   : > { %p1870_p8 = pnand %p1868_p6, %p1865_p10 }
  0x6b   : > { %1873 = shalt.err (!%p1870_p8)
}
  0x6c   : > { %s1874_s20 = scalar_lea.vmem %s360_s15, 256  ;;  %p1882_p9 = scmp.lt.s32.totalorder %s360_s15, %s360_s15 }
  0x6d   : > { %p1875_p12 = scmp.ne.s32.totalorder %s360_s15, %s1874_s20  ;;  %p1883_p2 = scmp.lt.s32.totalorder %s1874_s20, %s1874_s20 }
  0x6f   : > { %p1877_p0 = pnand %p1875_p12, %p2672_p11  ;;  %p1884_p4 = por %p1883_p2, %p1882_p9 }
  0x71   : > { %p1878_p5 = pneg %p1877_p0 }
  0x73   : > { %p1885_p3 = pnand %p1884_p4, %p1878_p5 }
  0x75   : > { %1888 = shalt.err (!%p1885_p3)
}
  0x76   : > { %p2673_p1 = scmp.ne.s32.totalorder %s2661_s30, 0  ;;  %s2674_s1 = smov 4  }
  0x77   : > { %s2675_s21 = smov 64   ;;  %s2078_s22 = smov [#allocation15]  }
  0x78   : > { %1692 = dma.hbm_to_vmem [thread:$0]  (!%p2673_p1), %s2616_s7, 256, %s360_s15, [#allocation13], %s2675_s21, %s2675_s21, %s2674_s1  }
  0x79   : > { %s373_s16 = sshll.u32 %s2078_s22, 4  ;;  %s1889_s11 = scalar_lea.hbm %s2617_s8, 16  ;;  %s374_s16 = int_to_ptr.vmem [resolvable:$true] %s373_s16 }
  0x7a   : > { %p1890_p3 = scmp.ne.s32.totalorder %s2617_s8, %s1889_s11  ;;  %p1896_p6 = scmp.lt.u32.totalorder %s1889_s11, %s2617_s8 }
  0x7c   : > { %p1892_p13 = pnand %p1890_p3, %p2672_p11 }
  0x7e   : > { %p1893_p10 = pneg %p1892_p13 }
  0x80   : > { %p1898_p8 = pnand %p1896_p6, %p1893_p10 }
  0x82   : > { %1901 = shalt.err (!%p1898_p8)
}
  0x83   : > { %s1902_s15 = scalar_lea.vmem %s374_s16, 16  ;;  %s1909_s1 = scalar_lea.vmem %s374_s16, 32 }
  0x84   : > { %p1903_p12 = scmp.ne.s32.totalorder %s374_s16, %s1902_s15  ;;  %p1910_p9 = scmp.lt.s32.totalorder %s374_s16, %s374_s16 }
  0x85   : > { %p1911_p2 = scmp.lt.s32.totalorder %s1909_s1, %s1902_s15 }
  0x86   : > { %p1905_p0 = pnand %p1903_p12, %p2672_p11 }
  0x87   : > { %p1912_p4 = por %p1911_p2, %p1910_p9 }
  0x88   : > { %p1906_p5 = pneg %p1905_p0 }
  0x8a   : > { %p1913_p7 = pnand %p1912_p4, %p1906_p5 }
  0x8c   : > { %1916 = shalt.err (!%p1913_p7)
}
  0x8d   : > { %1695 = dma.hbm_to_vmem [thread:$0]  (!%p2673_p1), %s2617_s8, 16, %s374_s16, [#allocation16]  }
  0x8e   : > { %s2357_s28 = scalar_lea.hbm %s2609_s0, %s2262_s26  ;;  %s394_s13 = scalar_lea.vmem [#allocation6], %s2259_s29 }
  0x8f   : > { %s402_s10 = sshll.u32 %s394_s13, 4  ;;  %s2676_s30 = sand.u32 1, %s2059_s19   ;;  %s403_s10 = int_to_ptr.vmem [resolvable:$true] %s402_s10 }
  0x90   : > { %s391_s22 = scalar_lea.sflag [#allocation7], %s2676_s30  ;;  %s1917_s12 = scalar_lea.hbm %s2357_s28, 64 }
  0x91   : > { %p1918_p7 = scmp.ne.s32.totalorder %s2357_s28, %s1917_s12  ;;  %p2677_p11 = scmp.ne.s32.totalorder %s2671_s3, 0 }
  0x92   : > { %s1922_s11 = scalar_lea.hbm %s2609_s0, 128  ;;  %p1923_p1 = scmp.lt.u32.totalorder %s2357_s28, %s2609_s0 }
  0x93   : > { %p1920_p3 = pnand %p1918_p7, %p2677_p11  ;;  %p1924_p10 = scmp.lt.u32.totalorder %s1922_s11, %s1917_s12 }
  0x94   : > { %p1926_p8 = scmp.lt.u32.totalorder %s1917_s12, %s2357_s28 }
  0x95   : > { %p1921_p13 = pneg %p1920_p3  ;;  %p1925_p6 = por %p1924_p10, %p1923_p1 }
  0x97   : > { %p1927_p12 = por %p1926_p8, %p1925_p6 }
  0x99   : > { %p1928_p0 = pnand %p1927_p12, %p1921_p13 }
  0x9b   : > { %1931 = shalt.err (!%p1928_p0)
}
  0x9c   : > { %s1932_s1 = scalar_lea.vmem %s403_s10, 64  ;;  %s2079_s9 = smov [#allocation6]  }
  0x9d   : > { %p1933_p5 = scmp.ne.s32.totalorder %s403_s10, %s1932_s1  ;;  %s1937_s21 = sshll.u32 %s2079_s9, 4  ;;  %s1938_s21 = int_to_ptr.vmem [resolvable:$false] %s1937_s21 }
  0x9e   : > { %s1939_s4 = scalar_lea.vmem %s1938_s21, 128  ;;  %p1940_p4 = scmp.lt.s32.totalorder %s403_s10, %s1938_s21 }
  0x9f   : > { %p1935_p9 = pnand %p1933_p5, %p2677_p11  ;;  %p1941_p7 = scmp.lt.s32.totalorder %s1939_s4, %s1932_s1 }
  0xa1   : > { %p1936_p2 = pneg %p1935_p9  ;;  %p1942_p3 = por %p1941_p7, %p1940_p4 }
  0xa3   : > { %p1943_p1 = pnand %p1942_p3, %p1936_p2 }
  0xa5   : > { %1946 = shalt.err (!%p1943_p1)
}
  0xa6   : > { %p2678_p10 = scmp.ne.s32.totalorder %s2669_s14, 0  ;;  %s2383_s30 = scalar_lea.hbm %s2611_s2, %s2262_s26 }
  0xa7   : > { %s431_s12 = scalar_lea.vmem [#allocation11], %s2259_s29  ;;  %s1947_s17 = scalar_lea.hbm %s2383_s30, 64 }
  0xa8   : > { %1699 = dma.hbm_to_vmem [thread:$0]  (!%p2678_p10), %s2357_s28, 64, %s403_s10, %s391_s22  }
  0xa9   : > { %s438_s16 = sshll.u32 %s431_s12, 4  ;;  %p1948_p13 = scmp.ne.s32.totalorder %s2383_s30, %s1947_s17  ;;  %s439_s16 = int_to_ptr.vmem [resolvable:$true] %s438_s16 }
  0xaa   : > { %s1952_s28 = scalar_lea.hbm %s2611_s2, 128  ;;  %p1953_p12 = scmp.lt.u32.totalorder %s2383_s30, %s2611_s2 }
  0xab   : > { %p1950_p6 = pnand %p1948_p13, %p2677_p11  ;;  %p1954_p0 = scmp.lt.u32.totalorder %s1952_s28, %s1947_s17 }
  0xac   : > { %p1956_p9 = scmp.lt.u32.totalorder %s1947_s17, %s2383_s30 }
  0xad   : > { %p1951_p8 = pneg %p1950_p6  ;;  %p1955_p5 = por %p1954_p0, %p1953_p12 }
  0xaf   : > { %p1957_p2 = por %p1956_p9, %p1955_p5 }
  0xb1   : > { %p1958_p4 = pnand %p1957_p2, %p1951_p8 }
  0xb3   : > { %1961 = shalt.err (!%p1958_p4)
}
  0xb4   : > { %s1962_s29 = scalar_lea.vmem %s439_s16, 64  ;;  %s2080_s26 = smov [#allocation11]  }
  0xb5   : > { %p1963_p7 = scmp.ne.s32.totalorder %s439_s16, %s1962_s29  ;;  %s1967_s15 = sshll.u32 %s2080_s26, 4  ;;  %s1968_s15 = int_to_ptr.vmem [resolvable:$false] %s1967_s15 }
  0xb6   : > { %s1969_s1 = scalar_lea.vmem %s1968_s15, 128  ;;  %p1970_p13 = scmp.lt.s32.totalorder %s439_s16, %s1968_s15 }
  0xb7   : > { %p1965_p3 = pnand %p1963_p7, %p2677_p11  ;;  %p1971_p6 = scmp.lt.s32.totalorder %s1969_s1, %s1962_s29 }
  0xb9   : > { %p1966_p1 = pneg %p1965_p3  ;;  %p1972_p10 = por %p1971_p6, %p1970_p13 }
  0xbb   : > { %p1973_p0 = pnand %p1972_p10, %p1966_p1 }
  0xbd   : > { %1976 = shalt.err (!%p1973_p0)
}
  0xbe   : > { %p2679_p12 = scmp.ne.s32.totalorder %s2669_s14, 0  ;;  %p2680_p8 = scmp.ne.s32.totalorder %s2660_s27, 0 }
  0xbf   : > { %s2407_s3 = sand.u32 (!%p2680_p8), 1, %s2055_s18   ;;  %p2681_p11 = scmp.ne.s32.totalorder (!%p2680_p8), %s2657_s25, 0 }
  0xc0   : > { %1705 = dma.hbm_to_vmem [thread:$0]  (!%p2679_p12), %s2383_s30, 64, %s439_s16, %s2283_s24  }
  0xc1   : > { %447 = sbr.rel (%p2680_p8) target bundleno = 1520 (0x5f0), region = 64  ;;  %s2410_s9 = sshll.u32 (!%p2680_p8), %s2407_s3, 2 }
  0xc2   : > { %s450_s21 = scalar_lea.sflag (!%p2680_p8), [#allocation7], %s2407_s3  ;;  %s453_s4 = scalar_lea.vmem (!%p2680_p8), [#allocation6], %s2410_s9 }
  0xc8   : > { %2030 = dma.done.wait (%p2681_p11), %s450_s21, 64  }
  0xc9   : > { %2032 = vsyncadd (%p2681_p11), %s450_s21, 4294967232  ;;  %s458_s27 = sand.u32 1, %s2181_s23   ;;  %s462_s24 = scalar_lea.vmem [#allocation9], %s2410_s9 }
  0xca   : > { %s459_s14 = scalar_lea.sflag [#allocation10], %s458_s27 }
  0xcb   : > { %2034 = dma.done.wait (%p2681_p11), %s459_s14, 128  }
  0xcc   : > { %2036 = vsyncadd (%p2681_p11), %s459_s14, 4294967168  ;;  %s471_s6 = scalar_lea.vmem [#allocation11], %s2410_s9  ;;  %p2682_p10 = scmp.eq.s32.totalorder %s2181_s23, 0 }
  0xce   : > { %2038 = dma.done.wait (%p2682_p10), [#allocation13], 512   ;;  %p2683_p5 = pmov %p2682_p10 }
  0xd0   : > { %2040 = vsyncadd (%p2683_p5), [#allocation13], 4294966784  ;;  %p2684_p9 = pmov %p2683_p5 }
  0xd1   : > { %p2685_p2 = pmov %p2683_p5 }
  0xd2   : > { %2042 = dma.done.wait (%p2684_p9), [#allocation16], 16  }
  0xd3   : > { %2044 = vsyncadd (%p2685_p2), [#allocation16], 4294967280  ;;  %v2081_v0 = vmov 0.0   ;;  %vm2082_vm0 = vmmov 0   ;;  %v1779_v1 = vld [vmem:[%s2614_s5] sm:$0xff]   ;;  %v1780_v2 = vld [vmem:[%s2614_s5 + $0x8] sm:$0xff]  }
  0xd4   : > { %1586 = vmatprep.subr.bf16.mxu0 %v2081_v0  ;;  %1590 = vmatprep.mubr.msk.bf16.mxu0 %vm2082_vm0, %v2081_v0  ;;  %v537_v3 = vld [vmem:[%s462_s24] sm:$0xf]  ;;  %vm561_vm1 = vcmask 261120   ;;  %v1781_v4 = vld [vmem:[#allocation12] sm:$0xff]   ;;  %v1782_v5 = vld [vmem:[#allocation12 + $0x8] sm:$0xff]   ;;  %s2686_s17 = sld [smem:[#allocation34_spill]] }
  0xd5   : > { %1594 = vmatprep.subr.bf16.mxu1 %v2081_v0  ;;  %1598 = vmatprep.mubr.msk.bf16.mxu1 %vm2082_vm0, %v2081_v0  ;;  %v713_v6 = vld [vmem:[%s453_s4] sm:$0xf]  ;;  %v1783_v7 = vld [vmem:[#allocation14] sm:$0xff]   ;;  %v1784_v8 = vld [vmem:[#allocation14 + $0x8] sm:$0xff]   ;;  %vm673_vm2 = vcmask 60416   ;;  %s2083_s11 = smov 104  }
  0xd6   : > { %1587 = vmatpush3.bf16.msra.mxu0 %v1779_v1  ;;  %1595 = vmatpush3.bf16.msra.mxu1 %v1783_v7  ;;  %v605_v9 = vld [vmem:[%s471_s6] sm:$0xf]  ;;  %s2084_s20 = smov 120   ;;  %s2687_s22 = sld [smem:[#allocation33_spill]]  ;;  %vm815_vm3 = vcmask 64512   ;;  %vm1043_vm4 = vcmask 1043456  }
  0xd7   : > { %1588 = vmatprep.subr.bf16.mxu0 %v2081_v0  ;;  %1596 = vmatprep.subr.bf16.mxu1 %v2081_v0  ;;  %s2085_s29 = smov 112   ;;  %v1522_v28 = vld [vmem:[#allocation15] ss:$0 sm:$0xff]  ;;  %s2688_s1 = sld [smem:[#allocation35_spill]]  ;;  %vm1242_vm5 = vcmask 126016   ;;  %vm1251_vm6 = vcmask 191616  }
  0xd8   : > { %s2086_s9 = smov 8   ;;  %s2087_s27 = smov 16   ;;  %vm1260_vm7 = vcmask 257216  }
  0xd9   : > { %s2689_s14 = sld [smem:[#allocation24_spill]]  ;;  %s2088_s24 = smov 24  }
  0xda   : > { %1589 = vmatpush3.bf16.msra.mxu0 %v1780_v2  ;;  %1597 = vmatpush3.bf16.msra.mxu1 %v1784_v8  ;;  %v1518_v10 = vld [vmem:[%s2686_s17] ss:$0 sm:$0xff]  ;;  %s1517_s6 = sshll.u32 %s2407_s3, 3  ;;  %s2690_s23 = sld [smem:[#allocation36_spill]] }
  0xdb   : > { %1602 = vmatprep.subr.bf16.mxu0 %v2081_v0  ;;  %1610 = vmatprep.subr.bf16.mxu1 %v2081_v0  ;;  %s2691_s30 = sld [smem:[#allocation29_spill]]  ;;  %s531_s16 = scalar_lea.vmem [#allocation17], %s1517_s6 }
  0xdc   : > { %v1528_v17 = vld [vmem:[%s2687_s22] ss:$0 sm:$0xff]  ;;  %s1345_s17 = sshll.u32 %s531_s16, 4  ;;  %s2692_s28 = sld [smem:[#allocation37_spill]]  ;;  %s2561_s17 = int_to_ptr.vmem [resolvable:$true] %s1345_s17 }
  0xdd   : > { %1591 = vmatmul.mubr.msk.bf16.vlgmr.msra.gmra.mrb[0].mxu0 %vm561_vm1, %v537_v3  ;;  %1599 = vmatmul.mubr.msk.bf16.vlgmr.msra.gmra.mrb[0].mxu1 %vm561_vm1, %v605_v9  ;;  %s1331_s22 = scalar_lea.sflag [#allocation8], %s2407_s3  ;;  %s2089_s26 = smov [#allocation17]  }
  0xde   : > { %1603 = vmatpush3.bf16.msra.mxu0 %v1781_v4  ;;  %1606 = vmatprep.mubr.msk.bf16.mxu0 %vm2082_vm0, %v2081_v0  ;;  %s1981_s15 = sshll.u32 %s2089_s26, 4  ;;  %s1982_s15 = int_to_ptr.vmem [resolvable:$false] %s1981_s15 }
  0xdf   : > { %1604 = vmatprep.subr.bf16.mxu0 %v2081_v0  ;;  %1612 = vmatprep.mubr.msk.bf16.mxu1 %vm2082_vm0, %v2081_v0  ;;  %s1549_s12 = sshll.u32 %s2689_s14, 7  ;;  %p1984_p13 = scmp.lt.s32.totalorder %s2561_s17, %s1982_s15 }
  0xe1   : > { %p2693_p7 = scmp.ne.s32.totalorder %s2691_s30, 0 }
  0xe2   : > { %1605 = vmatpush3.bf16.msra.mxu0 %v1782_v5  ;;  %s2559_s10 = scalar_lea.hbm %s2692_s28, %s1549_s12 }
  0xe3   : > { %1616 = vmatprep.subr.bf16.mxu0 %v2081_v0 }
  0xe5   : > { %1607 = vmatmul.mubr.msk.bf16.vlgmr.msra.gmra.mrb[4].mxu0 %vm561_vm1, %v713_v6 }
  0xe6   : > { %1618 = vmatprep.mubr.msk.bf16.mxu0 %vm2082_vm0, %v2081_v0 }
 0x1b0   : > { %v599_v11 = vpop.f32.mrb[0].mxu0  ;;  %v666_v29 = vpop.f32.mrb[0].mxu1 }
 0x1b1   : > { %v600_v12 = vadd.f32 %v1518_v10, %v599_v11  ;;  %v1592_v13 = vpop.f32.mrb[1].mxu0  ;;  %v667_v30 = vadd.f32 %v1522_v28, %v666_v29  ;;  %v1600_v31 = vpop.f32.mrb[1].mxu1 }
 0x1b2   : > { %v602_v14 = vpop.f32.mrb[2].mxu0  ;;  %v669_v32 = vpop.f32.mrb[2].mxu1 }
 0x1b3   : > { %v672_v15 = vpack.c.bf16 %v600_v12, %v600_v12  ;;  %v1593_v16 = vpop.f32.mrb[3].mxu0  ;;  %v2483_v33 = vpack.c.bf16 %v667_v30, %v667_v30  ;;  %v1601_v34 = vpop.f32.mrb[3].mxu1 }
 0x1b5   : > { %674 = vst.msk [vmem:[#allocation3] sm:$0xf] %vm673_vm2, %v672_v15  ;;  %703 = vrot.lane.b32.xlu1 %v672_v15, %s2083_s11  ;;  %680 = vrot.lane.b32.xlu0 %v672_v15, %s2084_s20  ;;  %676 = vst.msk [vmem:[#allocation4] sm:$0xf] %vm673_vm2, %v2483_v33 }
 0x1b8   : > { %v775_v18 = vpop.f32.mrb[4].mxu0 }
 0x1b9   : > { %v776_v19 = vadd.f32 %v1528_v17, %v775_v18  ;;  %693 = vrot.lane.b32.xlu0 %v672_v15, %s2085_s29  ;;  %v1608_v20 = vpop.f32.mrb[5].mxu0 }
 0x1ba   : > { %v778_v21 = vpop.f32.mrb[6].mxu0 }
 0x1bb   : > { %v781_v22 = vmul.f32 0.35355338, %v776_v19  ;;  %v1609_v23 = vpop.f32.mrb[7].mxu0 }
 0x1bc   : > { %v807_v24 = vld [vmem:[#allocation3] sm:$0xf]  ;;  %v811_v46 = vld [vmem:[#allocation4] sm:$0xf] }
 0x1bd   : > { %v782_v25 = vpack.c.bf16 %v781_v22, %v781_v22  ;;  %v820_v26 = vsel %vm815_vm3, %v807_v24, 0  ;;  %v1045_v49 = vsel %vm1043_vm4, %v811_v46, 0 }
 0x1be   : > { %1611 = vmatpush3.bf16.xpose.msra.mxu1 %v820_v26 }
 0x1bf   : > { %784 = vst.msk [vmem:[#allocation2] sm:$0xf] %vm673_vm2, %v782_v25  ;;  %793 = vrot.lane.b32.xlu0 %v782_v25, %s2085_s29  ;;  %788 = vrot.lane.b32.xlu1 %v782_v25, %s2084_s20 }
 0x1c0   : > { %1622 = vmatprep.subr.bf16.mxu1 %v2081_v0 }
 0x1c3   : > { %798 = vrot.lane.b32.xlu1 %v782_v25, %s2083_s11 }
 0x1c6   : > { %v803_v27 = vld [vmem:[#allocation2] sm:$0xf] }
 0x1c7   : > { %1613 = vmatmul.mubr.msk.bf16.vlgmr.msra.gmra.mrb[4].mxu1 %vm815_vm3, %v803_v27  ;;  %688 = vrot.lane.b32.xlu1 %v2483_v33, %s2084_s20 }
 0x1c8   : > { %1624 = vmatprep.mubr.msk.bf16.mxu1 %vm2082_vm0, %v2081_v0 }
 0x227   : > { %v704_v35 = vpop.permute.xlu1 %703  ;;  %v681_v36 = vpop.permute.xlu0 %680 }
 0x228   : > { %707 = vst.msk [vmem:[#allocation3 + $0xc] sm:$0xf] %vm673_vm2, %v704_v35  ;;  %684 = vst.msk [vmem:[#allocation3 + $0x4] sm:$0xf] %vm673_vm2, %v681_v36 }
 0x22b   : > { %v694_v37 = vpop.permute.xlu0 %693 }
 0x22c   : > { %697 = vst.msk [vmem:[#allocation3 + $0x8] sm:$0xf] %vm673_vm2, %v694_v37 }
 0x22f   : > { %v808_v38 = vld [vmem:[#allocation3 + $0x4] sm:$0xf]  ;;  %v810_v45 = vld [vmem:[#allocation3 + $0xc] sm:$0xf] }
 0x230   : > { %v866_v39 = vsel %vm815_vm3, %v808_v38, 0  ;;  %v958_v48 = vsel %vm815_vm3, %v810_v45, 0 }
 0x231   : > { %1617 = vmatpush3.bf16.xpose.msra.mxu0 %v866_v39  ;;  %v794_v40 = vpop.permute.xlu0 %793  ;;  %v789_v41 = vpop.permute.xlu1 %788 }
 0x232   : > { %797 = vst.msk [vmem:[#allocation2 + $0x8] sm:$0xf] %vm673_vm2, %v794_v40  ;;  %792 = vst.msk [vmem:[#allocation2 + $0x4] sm:$0xf] %vm673_vm2, %v789_v41  ;;  %1628 = vmatprep.subr.bf16.mxu0 %v2081_v0 }
 0x233   : > { %v809_v42 = vld [vmem:[#allocation3 + $0x8] sm:$0xf] }
 0x234   : > { %v912_v43 = vsel %vm815_vm3, %v809_v42, 0 }
 0x235   : > { %v799_v44 = vpop.permute.xlu1 %798  ;;  %1623 = vmatpush3.bf16.xpose.msra.mxu1 %v912_v43 }
 0x236   : > { %802 = vst.msk [vmem:[#allocation2 + $0xc] sm:$0xf] %vm673_vm2, %v799_v44  ;;  %1634 = vmatprep.subr.bf16.mxu1 %v2081_v0 }
 0x239   : > { %v804_v47 = vld [vmem:[#allocation2 + $0x4] sm:$0xf]  ;;  %v805_v50 = vld [vmem:[#allocation2 + $0x8] sm:$0xf]  ;;  %v689_v57 = vpop.permute.xlu1 %688 }
 0x23a   : > { %1619 = vmatmul.mubr.msk.bf16.vlgmr.msra.gmra.mrb[8].mxu0 %vm815_vm3, %v804_v47  ;;  %692 = vst.msk [vmem:[#allocation4 + $0x4] sm:$0xf] %vm673_vm2, %v689_v57 }
 0x23b   : > { %1629 = vmatpush3.bf16.xpose.msra.mxu0 %v958_v48  ;;  %1630 = vmatprep.mubr.msk.bf16.mxu0 %vm2082_vm0, %v2081_v0 }
 0x23c   : > { %1625 = vmatmul.mubr.msk.bf16.vlgmr.msra.gmra.mrb[8].mxu1 %vm815_vm3, %v805_v50  ;;  %1640 = vmatprep.subr.bf16.mxu0 %v2081_v0 }
 0x23d   : > { %1635 = vmatpush3.bf16.msra.mxu1 %v1045_v49  ;;  %1636 = vmatprep.mubr.msk.bf16.mxu1 %vm2082_vm0, %v2081_v0  ;;  %v806_v51 = vld [vmem:[#allocation2 + $0xc] sm:$0xf] }
 0x23e   : > { %1646 = vmatprep.subr.bf16.mxu1 %v2081_v0 }
 0x241   : > { %v812_v58 = vld [vmem:[#allocation4 + $0x4] sm:$0xf] }
 0x242   : > { %1631 = vmatmul.mubr.msk.bf16.vlgmr.msra.gmra.mrb[12].mxu0 %vm815_vm3, %v806_v51  ;;  %v1091_v59 = vsel %vm1043_vm4, %v812_v58, 0 }
 0x243   : > { %1642 = vmatprep.mubr.msk.bf16.mxu0 %vm2082_vm0, %v2081_v0  ;;  %1641 = vmatpush3.bf16.msra.mxu0 %v1091_v59 }
 0x244   : > { %1652 = vmatprep.subr.bf16.mxu0 %v2081_v0 }
 0x29a   : > { %v856_v52 = vpop.f32.mrb[4].mxu1 }
 0x29b   : > { %v1614_v53 = vpop.f32.mrb[5].mxu1  ;;  %v1000_v54 = vsel %vm815_vm3, %v856_v52, -inf }
 0x29c   : > { %1001 = vmax.xlane.f32.xlu0 %v1000_v54  ;;  %v859_v55 = vpop.f32.mrb[6].mxu1 }
 0x29d   : > { %v1615_v56 = vpop.f32.mrb[7].mxu1 }
 0x30d   : > { %v902_v60 = vpop.f32.mrb[8].mxu0 }
 0x30e   : > { %v1620_v61 = vpop.f32.mrb[9].mxu0  ;;  %v1003_v62 = vsel %vm815_vm3, %v902_v60, -inf }
 0x30f   : > { %v948_v63 = vpop.f32.mrb[8].mxu1  ;;  %1004 = vmax.xlane.f32.xlu1 %v1003_v62  ;;  %v905_v1 = vpop.f32.mrb[10].mxu0  ;;  %v1786_v61 = vld [vmem:[%s2688_s1 + $0x8] sm:$0xff]  }
 0x310   : > { %v1621_v2 = vpop.f32.mrb[11].mxu0  ;;  %v1626_v3 = vpop.f32.mrb[9].mxu1  ;;  %v1006_v4 = vsel %vm815_vm3, %v948_v63, -inf }
 0x311   : > { %1007 = vmax.xlane.f32.xlu0 %v1006_v4  ;;  %v951_v5 = vpop.f32.mrb[10].mxu1 }
 0x312   : > { %v1627_v6 = vpop.f32.mrb[11].mxu1 }
 0x315   : > { %v994_v7 = vpop.f32.mrb[12].mxu0 }
 0x316   : > { %v1632_v8 = vpop.f32.mrb[13].mxu0  ;;  %v1009_v9 = vsel %vm815_vm3, %v994_v7, -inf }
 0x317   : > { %1010 = vmax.xlane.f32.xlu0 %v1009_v9  ;;  %v997_v10 = vpop.f32.mrb[14].mxu0 }
 0x318   : > { %v1633_v11 = vpop.f32.mrb[15].mxu0 }
 0x320   : > { %708 = vrot.lane.b32.xlu1 %v2483_v33, %s2083_s11 }
 0x329   : > { %v1002_v12 = vpop.xlane.xlu0 %1001 }
 0x32a   : > { %v1012_v13 = vsub.f32 %v856_v52, %v1002_v12 }
 0x32c   : > { %v1016_v14 = vmul.f32 1.442695, %v1012_v13 }
 0x32d   : > { %698 = vrot.lane.b32.xlu0 %v2483_v33, %s2085_s29  ;;  %s1977_s29 = scalar_lea.vmem %s2561_s17, 128 }
 0x32e   : > { %1787 = vpow2.f32 %v1016_v14  ;;  %p1978_p4 = scmp.ne.s32.totalorder %s2561_s17, %s1977_s29 }
 0x330   : > { %p1979_p3 = pnand %p1978_p4, %p2693_p7 }
 0x332   : > { %p1980_p1 = pneg %p1979_p3 }
 0x338   : > { %v1788_v15 = vpop.eup %1787 }
 0x339   : > { %v1036_v16 = vpack.c.bf16 %v1788_v15, %v1788_v15  ;;  %v1024_v35 = vsel %vm815_vm3, %v1788_v15, 0.0 }
 0x33b   : > { %1637 = vmatmul.mubr.msk.bf16.vlgmr.msra.gmra.mrb[12].mxu1 %vm815_vm3, %v1036_v16  ;;  %v1544_v16 = vld [vmem:[%s2690_s23] ss:$0 sm:$0xff] }
 0x33c   : > { %1648 = vmatprep.mubr.msk.bf16.mxu1 %vm2082_vm0, %v2081_v0 }
 0x39c   : > { %v1005_v17 = vpop.xlane.xlu1 %1004 }
 0x39d   : > { %v1013_v18 = vsub.f32 %v902_v60, %v1005_v17  ;;  %v1785_v60 = vld [vmem:[%s2688_s1] sm:$0xff]  }
 0x39e   : > { %v1008_v19 = vpop.xlane.xlu0 %1007 }
 0x39f   : > { %v1018_v20 = vmul.f32 1.442695, %v1013_v18  ;;  %v1014_v21 = vsub.f32 %v948_v63, %v1008_v19 }
 0x3a0   : > { %v709_v22 = vpop.permute.xlu1 %708 }
 0x3a1   : > { %1789 = vpow2.f32 %v1018_v20  ;;  %v1020_v23 = vmul.f32 1.442695, %v1014_v21  ;;  %712 = vst.msk [vmem:[#allocation4 + $0xc] sm:$0xf] %vm673_vm2, %v709_v22 }
 0x3a3   : > { %1791 = vpow2.f32 %v1020_v23 }
 0x3a4   : > { %v1011_v24 = vpop.xlane.xlu0 %1010 }
 0x3a5   : > { %v1015_v25 = vsub.f32 %v994_v7, %v1011_v24 }
 0x3a7   : > { %v1022_v26 = vmul.f32 1.442695, %v1015_v25 }
 0x3a8   : > { %v699_v27 = vpop.permute.xlu0 %698  ;;  %v814_v29 = vld [vmem:[#allocation4 + $0xc] sm:$0xf] }
 0x3a9   : > { %1793 = vpow2.f32 %v1022_v26  ;;  %702 = vst.msk [vmem:[#allocation4 + $0x8] sm:$0xf] %vm673_vm2, %v699_v27  ;;  %v1183_v33 = vsel %vm1043_vm4, %v814_v29, 0 }
 0x3ab   : > { %v1790_v28 = vpop.eup %1789 }
 0x3ac   : > { %v1027_v30 = vsel %vm815_vm3, %v1790_v28, 0.0  ;;  %v1037_v31 = vpack.c.bf16 %v1790_v28, %v1790_v28 }
 0x3ad   : > { %v1792_v32 = vpop.eup %1791  ;;  %1028 = vadd.xlane.f32.xlu1 %v1027_v30 }
 0x3ae   : > { %1643 = vmatmul.mubr.msk.bf16.vlgmr.msra.gmra.mrb[16].mxu0 %vm815_vm3, %v1037_v31  ;;  %v1030_v34 = vsel %vm815_vm3, %v1792_v32, 0.0  ;;  %v1038_v39 = vpack.c.bf16 %v1792_v32, %v1792_v32 }
 0x3af   : > { %1653 = vmatpush3.bf16.msra.mxu0 %v1183_v33  ;;  %1031 = vadd.xlane.f32.xlu0 %v1030_v34 }
 0x3b0   : > { %v813_v36 = vld [vmem:[#allocation4 + $0x8] sm:$0xf]  ;;  %1654 = vmatprep.mubr.msk.bf16.mxu0 %vm2082_vm0, %v2081_v0 }
 0x3b1   : > { %1025 = vadd.xlane.f32.xlu1 %v1024_v35  ;;  %v1137_v37 = vsel %vm1043_vm4, %v813_v36, 0 }
 0x3b2   : > { %1647 = vmatpush3.bf16.msra.mxu1 %v1137_v37 }
 0x3b3   : > { %v1794_v38 = vpop.eup %1793  ;;  %1658 = vmatprep.subr.bf16.mxu1 %v2081_v0 }
 0x3b4   : > { %v1033_v40 = vsel %vm815_vm3, %v1794_v38, 0.0  ;;  %v1039_v41 = vpack.c.bf16 %v1794_v38, %v1794_v38 }
 0x3b5   : > { %1034 = vadd.xlane.f32.xlu0 %v1033_v40  ;;  %1649 = vmatmul.mubr.msk.bf16.vlgmr.msra.gmra.mrb[16].mxu1 %vm815_vm3, %v1038_v39 }
 0x3b6   : > { %1655 = vmatmul.mubr.msk.bf16.vlgmr.msra.gmra.mrb[20].mxu0 %vm815_vm3, %v1039_v41  ;;  %1662 = vmatprep.mubr.msk.bf16.mxu1 %vm2082_vm0, %v2081_v0 }
 0x3b7   : > { %1659 = vmatpush3.bf16.msra.mxu1 %v1785_v60 }
 0x3b8   : > { %1660 = vmatprep.subr.bf16.mxu1 %v2081_v0 }
 0x3bb   : > { %1661 = vmatpush3.bf16.msra.mxu1 %v1786_v61 }
 0x40e   : > { %v1081_v42 = vpop.f32.mrb[12].mxu1 }
 0x40f   : > { %v1638_v43 = vpop.f32.mrb[13].mxu1 }
 0x410   : > { %v1084_v44 = vpop.f32.mrb[14].mxu1 }
 0x411   : > { %v1639_v45 = vpop.f32.mrb[15].mxu1 }
 0x43a   : > { %v1029_v46 = vpop.xlane.xlu1 %1028 }
 0x43c   : > { %v1032_v51 = vpop.xlane.xlu0 %1031 }
 0x43e   : > { %v1026_v47 = vpop.xlane.xlu1 %1025 }
 0x43f   : > { %1795 = vrcp.f32 %v1026_v47 }
 0x440   : > { %1797 = vrcp.f32 %v1029_v46 }
 0x441   : > { %1799 = vrcp.f32 %v1032_v51 }
 0x442   : > { %v1035_v52 = vpop.xlane.xlu0 %1034 }
 0x443   : > { %1801 = vrcp.f32 %v1035_v52 }
 0x449   : > { %v1796_v48 = vpop.eup %1795 }
 0x44a   : > { %v1229_v49 = vmul.f32 %v1796_v48, %v1081_v42  ;;  %v1798_v53 = vpop.eup %1797 }
 0x44b   : > { %v1800_v62 = vpop.eup %1799 }
 0x44c   : > { %v1233_v50 = vpack.c.bf16 %v1229_v49, %v1229_v49 }
 0x44d   : > { %v1802_v4 = vpop.eup %1801 }
 0x44e   : > { %1234 = vst.msk [vmem:[#allocation5] sm:$0xf] %vm673_vm2, %v1233_v50 }
 0x481   : > { %v1127_v54 = vpop.f32.mrb[16].mxu0 }
 0x482   : > { %v1230_v55 = vmul.f32 %v1798_v53, %v1127_v54  ;;  %v1644_v56 = vpop.f32.mrb[17].mxu0 }
 0x483   : > { %v1130_v57 = vpop.f32.mrb[18].mxu0 }
 0x484   : > { %v1555_v58 = vpack.c.bf16 %v1230_v55, %v1230_v55  ;;  %v1645_v59 = vpop.f32.mrb[19].mxu0 }
 0x486   : > { %1239 = vrot.lane.b32.xlu0 %v1555_v58, %s2086_s9  ;;  %s1983_s9 = scalar_lea.vmem %s1982_s15, 256 }
 0x487   : > { %p1985_p6 = scmp.lt.s32.totalorder %s1983_s9, %s1977_s29 }
 0x488   : > { %v1173_v63 = vpop.f32.mrb[16].mxu1 }
 0x489   : > { %v1231_v1 = vmul.f32 %v1800_v62, %v1173_v63  ;;  %v1650_v2 = vpop.f32.mrb[17].mxu1  ;;  %v1219_v3 = vpop.f32.mrb[20].mxu0  ;;  %p1986_p0 = por %p1985_p6, %p1984_p13 }
 0x48a   : > { %v1176_v5 = vpop.f32.mrb[18].mxu1  ;;  %v1656_v6 = vpop.f32.mrb[21].mxu0  ;;  %v1232_v8 = vmul.f32 %v1802_v4, %v1219_v3 }
 0x48b   : > { %v1556_v7 = vpack.c.bf16 %v1231_v1, %v1231_v1  ;;  %v1651_v9 = vpop.f32.mrb[19].mxu1  ;;  %v1222_v10 = vpop.f32.mrb[22].mxu0  ;;  %p1987_p12 = pnand %p1986_p0, %p1980_p1 }
 0x48c   : > { %v1657_v11 = vpop.f32.mrb[23].mxu0  ;;  %v1557_v12 = vpack.c.bf16 %v1232_v8, %v1232_v8 }
 0x48d   : > { %1248 = vrot.lane.b32.xlu1 %v1556_v7, %s2087_s27 }
 0x491   : > { %1257 = vrot.lane.b32.xlu1 %v1557_v12, %s2088_s24 }
 0x4f8   : > { %v1240_v0 = vpop.permute.xlu0 %1239 }
 0x4f9   : > { %1243 = vst.msk [vmem:[#allocation5] sm:$0xf] %vm1242_vm5, %v1240_v0 }
 0x4ff   : > { %v1249_v13 = vpop.permute.xlu1 %1248 }
 0x500   : > { %1252 = vst.msk [vmem:[#allocation5] sm:$0xf] %vm1251_vm6, %v1249_v13 }
 0x503   : > { %v1258_v14 = vpop.permute.xlu1 %1257 }
 0x504   : > { %1261 = vst.msk [vmem:[#allocation5] sm:$0xf] %vm1260_vm7, %v1258_v14 }
 0x50b   : > { %v1262_v15 = vld [vmem:[#allocation5] sm:$0xf] }
 0x50c   : > { %1663 = vmatmul.mubr.msk.bf16.vlgmr.msra.gmra.mrb[20].mxu1 %vm561_vm1, %v1262_v15 }
 0x5df   : > { %v1323_v17 = vpop.f32.mrb[20].mxu1 }
 0x5e0   : > { %v1324_v18 = vadd.f32 %v1544_v16, %v1323_v17  ;;  %v1664_v19 = vpop.f32.mrb[21].mxu1 }
 0x5e1   : > { %v1326_v20 = vpop.f32.mrb[22].mxu1 }
 0x5e2   : > { %v1665_v21 = vpop.f32.mrb[23].mxu1  ;;  %1329 = vst.msk [vmem:[%s531_s16] sm:$0xff] %vm561_vm1, %v1324_v18 }
 0x5e3   : > { %1990 = shalt.err (!%p1987_p12)
}
 0x5e4   : > { %s1991_s3 = scalar_lea.hbm %s2559_s10, 128  ;;  %s1995_s27 = scalar_lea.hbm %s2692_s28, 256 }
 0x5e5   : > { %p1992_p8 = scmp.ne.s32.totalorder %s2559_s10, %s1991_s3  ;;  %p1996_p5 = scmp.lt.u32.totalorder %s2559_s10, %s2692_s28 }
 0x5e6   : > { %p1997_p9 = scmp.lt.u32.totalorder %s1995_s27, %s1991_s3  ;;  %p1999_p4 = scmp.lt.u32.totalorder %s1991_s3, %s2559_s10 }
 0x5e7   : > { %p1993_p11 = pnand %p1992_p8, %p2693_p7 }
 0x5e8   : > { %p1998_p2 = por %p1997_p9, %p1996_p5 }
 0x5e9   : > { %p1994_p10 = pneg %p1993_p11 }
 0x5ea   : > { %p2000_p3 = por %p1999_p4, %p1998_p2 }
 0x5ec   : > { %p2001_p1 = pnand %p2000_p3, %p1994_p10 }
 0x5ee   : > { %2004 = shalt.err (!%p2001_p1)
}
 0x5ef   : > { %1684 = dma.vmem_to_hbm [thread:$0]  (%p2693_p7), %s2561_s17, 128, %s2559_s10, %s1331_s22  }
 0x5f0 PF: > { %s2694_s6 = sld [smem:[#allocation23_spill]]  ;;  %s2695_s25 = sld [smem:[#allocation27_spill]] }
 0x5f1   : > { %s2696_s13 = sld [smem:[#allocation26_spill]] }
 0x5f6   : > { %s1357_s23 = sand.u32 1, %s2694_s6   ;;  %p2697_p13 = scmp.ne.s32.totalorder %s2695_s25, 0 }
 0x5f7   : > { %p2698_p6 = scmp.ge.s32.totalorder %s2696_s13, 2  ;;  %s1358_s12 = scalar_lea.sflag [#allocation8], %s1357_s23 }
 0x5f9   : > { %p1707_p0 = pnand %p2698_p6, %p2697_p13 }
 0x5fb   : > { %2046 = dma.done.wait (!%p1707_p0), %s1358_s12, 128  }
 0x5fc   : > { %2048 = vsyncadd (!%p1707_p0), %s1358_s12, 4294967168  ;;  %s32_s22 = sadd.s32 1, %s2696_s13   ;;  %s2699_s30 = sld [smem:[#allocation30_spill]] }
 0x5fd   : > { %p29_p12 = scmp.ge.s32.totalorder %s32_s22, 4   ;;  %s2700_s20 = sld [smem:[#allocation25_spill]] }
 0x5fe   : > { %s2701_s21 = sld [smem:[#allocation28_spill]]  ;;  %s2702_s17 = smov %s2055_s18 }
 0x5ff   : > { %s2703_s18 = smov %s2059_s19  ;;  %31 = sbr.rel (!%p29_p12) target bundleno = 18 (0x12), region = 158 }
 0x602   : > { %s2704_s19 = smov %s2699_s30 }
 0x606   :  { %1363 = vsyncpa [#allocation7], 1 }
 0x607   :  { %1365 = vsyncpa [#allocation7 + $0x1], 1 }
 0x608   :  { %1366 = vsyncpa [#allocation10], 1 }
 0x609   :  { %1368 = vsyncpa [#allocation10 + $0x1], 1 }
 0x60a   :  { %1369 = vsyncpa [#allocation13], 1 }
 0x60b   :  { %1370 = vsyncpa [#allocation16], 1 }
 0x60c   :  { %1371 = vsyncpa [#allocation8], 1 }
 0x60d   :  { %1373 = vsyncpa [#allocation8 + $0x1], 1 }

</bundles_post_ra>
